<compile_context>
chip_gen: v5e
topology: v5e:2x2
jax: 0.10.0
libtpu: 0.0.40
codegen_flags: <defaults>
</compile_context>

<pallas_src>
import numpy as np
import jax
import jax.numpy as jnp
from jax import lax
from jax.experimental import pallas as pl
from jax.experimental.pallas import tpu as pltpu


# ----------------------------------------------------------------------------
# Fused FRRU kernel (one batch element per grid step)
# ----------------------------------------------------------------------------
def _frru_fused_kernel(y_ref, z_ref, w1_ref, b1_ref, w2_ref, b2_ref,
                       wr_ref, br_ref, yout_ref, zout_ref, xp1, xp2):
    # y_ref   : (1, H, W, Cp)                input stream y (NHWC)
    # z_ref   : (1, H, S, W, S*Cz)           z reshaped so pool/upsample are slices
    # w1_ref  : (9, Cp+Cz, Cout)             conv1 weights, BN scale folded, tap-major
    # b1_ref  : (1, Cout)                    conv1 folded-BN shift
    # w2_ref  : (9, Cout, Cout)              conv2 weights, BN scale folded
    # b2_ref  : (1, Cout)
    # wr_ref  : (Cout, Cz)                   conv_res 1x1 weights
    # br_ref  : (1, Cz)                      conv_res bias
    # yout_ref: (1, H, W, Cout)              y'
    # zout_ref: (1, H, S, W, S*Cz)           z' (same layout as z_ref, aliased)
    # xp1/xp2 : VMEM zero-padded conv inputs (H+2, W+2, Cin1) / (H+2, W+2, Cout)
    _, H, W, Cp = y_ref.shape
    S = z_ref.shape[2]
    Cz = z_ref.shape[4] // S
    Cout = yout_ref.shape[3]
    Cin1 = Cp + Cz

    # ---- MaxPool2d(S, S) on z: max over the S*S window positions (static slices) --
    zp = z_ref[0, :, 0, :, 0:Cz]
    for sy in range(S):
        for sx in range(S):
            if sy == 0 and sx == 0:
                continue
            zp = jnp.maximum(zp, z_ref[0, :, sy, :, sx * Cz:(sx + 1) * Cz])

    # ---- x = cat([y, pool(z)], channels) written into a zero-padded VMEM tile ----
    xp1[...] = jnp.zeros(xp1.shape, xp1.dtype)
    xp1[1:H + 1, 1:W + 1, 0:Cp] = y_ref[0].astype(xp1.dtype)
    xp1[1:H + 1, 1:W + 1, Cp:Cin1] = zp.astype(xp1.dtype)

    def conv3x3(xpad, w_ref, b_ref, cin):
        # 9 full-image (H*W, cin) x (cin, Cout) dots, accumulated in f32 on the MXU.
        acc = None
        for k in range(9):
            dy, dx = k // 3, k % 3
            tap = xpad[dy:dy + H, dx:dx + W, :].reshape(H * W, cin)
            t = jnp.dot(tap, w_ref[k], preferred_element_type=jnp.float32)
            acc = t if acc is None else acc + t
        # folded-BN shift + ReLU epilogue (scale already folded into the weights)
        return jnp.maximum(acc + b_ref[...], 0.0)            # (H*W, Cout), f32

    # ---- conv1 + BN + ReLU ----
    y1 = conv3x3(xp1, w1_ref, b1_ref, Cin1)

    # ---- conv2 + BN + ReLU (input zero-padded in a second VMEM scratch) ----
    xp2[...] = jnp.zeros(xp2.shape, xp2.dtype)
    xp2[1:H + 1, 1:W + 1, :] = y1.reshape(H, W, Cout)
    y2 = conv3x3(xp2, w2_ref, b2_ref, Cout)

    yout_ref[0] = y2.reshape(H, W, Cout).astype(yout_ref.dtype)

    # ---- conv_res: single (H*W, Cout) x (Cout, Cz) dot + bias ----
    xr = jnp.dot(y2, wr_ref[...], preferred_element_type=jnp.float32) + br_ref[...]
    xr3 = xr.reshape(H, W, Cz)

    # ---- nearest-neighbour upsample fused with the residual add:
    #      z'[h, sy, w, sx, :] = z[h, sy, w, sx, :] + xr[h, w, :]
    for sy in range(S):
        for sx in range(S):
            zout_ref[0, :, sy, :, sx * Cz:(sx + 1) * Cz] = (
                z_ref[0, :, sy, :, sx * Cz:(sx + 1) * Cz] + xr3
            ).astype(zout_ref.dtype)


# ----------------------------------------------------------------------------
# Wrapper: NCHW <-> NHWC plumbing, BN fold, single pallas_call
# ----------------------------------------------------------------------------
def frru_forward(params, y, z, scale):
    # y: (N, prev_channels, H, W) NCHW      z: (N, 32, H*scale, W*scale) NCHW
    N, Cp, H, W = y.shape
    Cz = z.shape[1]
    Hz, Wz = z.shape[2], z.shape[3]
    Cout = params["w1"].shape[-1]
    Cin1 = Cp + Cz

    # NCHW -> NHWC (layout plumbing, left to XLA)
    y_nhwc = jnp.transpose(y, (0, 2, 3, 1))
    z_nhwc = jnp.transpose(z, (0, 2, 3, 1))
    # Free row-major reshape: pool windows / upsample targets become plain slices.
    z5 = z_nhwc.reshape(N, H, scale, W, scale * Cz)

    # Fold BN scale into the conv weights (per output channel); shift stays a bias.
    w1f = (params["w1"] * params["scale1"]).reshape(9, Cin1, Cout)
    w2f = (params["w2"] * params["scale2"]).reshape(9, Cout, Cout)
    b1 = params["shift1"].reshape(1, Cout)
    b2 = params["shift2"].reshape(1, Cout)
    wr = params["wres"]
    br = params["bres"].reshape(1, Cz)

    yp_nhwc, zp5 = pl.pallas_call(
        _frru_fused_kernel,
        out_shape=(
            jax.ShapeDtypeStruct((N, H, W, Cout), y_nhwc.dtype),
            jax.ShapeDtypeStruct((N, H, scale, W, scale * Cz), z_nhwc.dtype),
        ),
        grid=(N,),
        in_specs=[
            pl.BlockSpec((1, H, W, Cp), lambda n: (n, 0, 0, 0)),
            pl.BlockSpec((1, H, scale, W, scale * Cz), lambda n: (n, 0, 0, 0, 0)),
            pl.BlockSpec((9, Cin1, Cout), lambda n: (0, 0, 0)),
            pl.BlockSpec((1, Cout), lambda n: (0, 0)),
            pl.BlockSpec((9, Cout, Cout), lambda n: (0, 0, 0)),
            pl.BlockSpec((1, Cout), lambda n: (0, 0)),
            pl.BlockSpec((Cout, Cz), lambda n: (0, 0)),
            pl.BlockSpec((1, Cz), lambda n: (0, 0)),
        ],
        out_specs=(
            pl.BlockSpec((1, H, W, Cout), lambda n: (n, 0, 0, 0)),
            pl.BlockSpec((1, H, scale, W, scale * Cz), lambda n: (n, 0, 0, 0, 0)),
        ),
        scratch_shapes=[
            pltpu.VMEM((H + 2, W + 2, Cin1), jnp.float32),
            pltpu.VMEM((H + 2, W + 2, Cout), jnp.float32),
        ],
        input_output_aliases={1: 1},  # z' overwrites the reshaped z buffer in place
        compiler_params=pltpu.CompilerParams(
            dimension_semantics=("parallel",)),
    )(y_nhwc, z5, w1f, b1, w2f, b2, wr, br)

    z_prime = zp5.reshape(N, Hz, Wz, Cz)
    # back to NCHW to match the PyTorch module's return convention
    return jnp.transpose(yp_nhwc, (0, 3, 1, 2)), jnp.transpose(z_prime, (0, 3, 1, 2))


# ----------------------------------------------------------------------------
# Parameter init (deterministic, matches the nn.Module's shapes)
# ----------------------------------------------------------------------------
def init_frru_params(key, prev_channels, out_channels):
    ks = jax.random.split(key, 8)
    cin1 = prev_channels + 32
    w1 = 0.1 * jax.random.normal(ks[0], (3, 3, cin1, out_channels), jnp.float32)       # conv1 (HWIO)
    g1 = 1.0 + 0.1 * jax.random.normal(ks[1], (out_channels,), jnp.float32)            # BN1 gamma
    b1 = 0.1 * jax.random.normal(ks[2], (out_channels,), jnp.float32)                  # BN1 beta
    w2 = 0.1 * jax.random.normal(ks[3], (3, 3, out_channels, out_channels), jnp.float32)
    g2 = 1.0 + 0.1 * jax.random.normal(ks[4], (out_channels,), jnp.float32)
    b2 = 0.1 * jax.random.normal(ks[5], (out_channels,), jnp.float32)
    wres = 0.1 * jax.random.normal(ks[6], (out_channels, 32), jnp.float32)              # conv_res 1x1 (Cin, Cout)
    bres = 0.1 * jax.random.normal(ks[7], (32,), jnp.float32)
    eps = 1e-5
    # BatchNorm folded in inference mode (running_mean=0, running_var=1):
    #   y = gamma * (x - mean)/sqrt(var + eps) + beta  ->  scale*x + shift
    scale1 = g1 / jnp.sqrt(1.0 + eps)
    shift1 = b1
    scale2 = g2 / jnp.sqrt(1.0 + eps)
    shift2 = b2
    return dict(w1=w1, scale1=scale1, shift1=shift1,
                w2=w2, scale2=scale2, shift2=shift2,
                wres=wres, bres=bres)


# ----------------------------------------------------------------------------
# Pure-JAX reference (sanity check of the Pallas path)
# ----------------------------------------------------------------------------
def frru_reference(params, y, z, scale):
    N, Cp, H, W = y.shape
    Cz = z.shape[1]
    y_nhwc = jnp.transpose(y, (0, 2, 3, 1))
    z_nhwc = jnp.transpose(z, (0, 2, 3, 1))
    z_pool = z_nhwc.reshape(N, H, scale, W, scale, Cz).max(axis=(2, 4))
    x = jnp.concatenate([y_nhwc, z_pool], axis=-1)
    dn = ("NHWC", "HWIO", "NHWC")
    c1 = lax.conv_general_dilated(x, params["w1"], (1, 1), ((1, 1), (1, 1)),
                                  dimension_numbers=dn,
                                  precision=lax.Precision.HIGHEST)
    y1 = jnp.maximum(c1 * params["scale1"] + params["shift1"], 0.0)
    c2 = lax.conv_general_dilated(y1, params["w2"], (1, 1), ((1, 1), (1, 1)),
                                  dimension_numbers=dn,
                                  precision=lax.Precision.HIGHEST)
    y2 = jnp.maximum(c2 * params["scale2"] + params["shift2"], 0.0)
    xr = jnp.einsum("nhwc,co->nhwo", y2, params["wres"],
                    precision=lax.Precision.HIGHEST) + params["bres"]
    x_up = jnp.repeat(jnp.repeat(xr, scale, axis=1), scale, axis=2)
    z_prime = z_nhwc + x_up
    return jnp.transpose(y2, (0, 3, 1, 2)), jnp.transpose(z_prime, (0, 3, 1, 2))


if __name__ == "__main__":
    prev_channels, out_channels, scale = 16, 32, 2
    N, H, W = 2, 8, 8

    key = jax.random.PRNGKey(0)
    kp, ky, kz = jax.random.split(key, 3)
    params = init_frru_params(kp, prev_channels, out_channels)
    y = jax.random.normal(ky, (N, prev_channels, H, W), jnp.float32)
    z = jax.random.normal(kz, (N, 32, H * scale, W * scale), jnp.float32)

    fwd = jax.jit(frru_forward, static_argnums=3)
    y_prime, z_prime = fwd(params, y, z, scale)
    jax.block_until_ready((y_prime, z_prime))

    assert y_prime.shape == (N, out_channels, H, W)
    assert z_prime.shape == (N, 32, H * scale, W * scale)

    y_ref, z_ref = frru_reference(params, y, z, scale)
    np.testing.assert_allclose(np.asarray(y_prime), np.asarray(y_ref),
                               rtol=2e-2, atol=2e-2)
    np.testing.assert_allclose(np.asarray(z_prime), np.asarray(z_ref),
                               rtol=2e-2, atol=2e-2)

    print("KERNEL_OK")
</pallas_src>

<mosaic_0001>
module attributes {stable_mosaic.version = 11 : i64} {
  func.func @_frru_fused_kernel(%arg0: i32, %arg1: memref<1x8x8x16xf32, #tpu.memory_space<vmem>>, %arg2: memref<1x8x2x8x64xf32, #tpu.memory_space<vmem>>, %arg3: memref<9x48x32xf32, #tpu.memory_space<vmem>>, %arg4: memref<1x32xf32, #tpu.memory_space<vmem>>, %arg5: memref<9x32x32xf32, #tpu.memory_space<vmem>>, %arg6: memref<1x32xf32, #tpu.memory_space<vmem>>, %arg7: memref<32x32xf32, #tpu.memory_space<vmem>>, %arg8: memref<1x32xf32, #tpu.memory_space<vmem>>, %arg9: memref<1x8x8x32xf32, #tpu.memory_space<vmem>>, %arg10: memref<1x8x2x8x64xf32, #tpu.memory_space<vmem>>, %arg11: memref<10x10x48xf32, #tpu.memory_space<vmem>>, %arg12: memref<10x10x32xf32, #tpu.memory_space<vmem>>) attributes {dimension_semantics = [#tpu.dimension_semantics<parallel>], iteration_bounds = array<i64: 2>, scalar_prefetch = 0 : i64, scratch_operands = 2 : i64, tpu.core_type = #tpu.core_type<tc>, window_params = [{transform_indices = @transform_0, window_bounds = array<i64: 1, 8, 8, 16>}, {transform_indices = @transform_1, window_bounds = array<i64: 1, 8, 2, 8, 64>}, {pipeline_mode = #tpu.pipeline_mode<synchronous>, transform_indices = @transform_2, window_bounds = array<i64: 9, 48, 32>}, {pipeline_mode = #tpu.pipeline_mode<synchronous>, transform_indices = @transform_3, window_bounds = array<i64: 1, 32>}, {pipeline_mode = #tpu.pipeline_mode<synchronous>, transform_indices = @transform_4, window_bounds = array<i64: 9, 32, 32>}, {pipeline_mode = #tpu.pipeline_mode<synchronous>, transform_indices = @transform_5, window_bounds = array<i64: 1, 32>}, {pipeline_mode = #tpu.pipeline_mode<synchronous>, transform_indices = @transform_6, window_bounds = array<i64: 32, 32>}, {pipeline_mode = #tpu.pipeline_mode<synchronous>, transform_indices = @transform_7, window_bounds = array<i64: 1, 32>}, {transform_indices = @transform_8, window_bounds = array<i64: 1, 8, 8, 32>}, {transform_indices = @transform_9, window_bounds = array<i64: 1, 8, 2, 8, 64>}]} {
    %c0 = arith.constant 0 : index
    %c0_0 = arith.constant 0 : index
    %c0_1 = arith.constant 0 : index
    %c0_2 = arith.constant 0 : index
    %c0_3 = arith.constant 0 : index
    %0 = vector.load %arg2[%c0, %c0_0, %c0_1, %c0_2, %c0_3] : memref<1x8x2x8x64xf32, #tpu.memory_space<vmem>>, vector<1x8x1x8x32xf32>
    %1 = vector.shape_cast %0 : vector<1x8x1x8x32xf32> to vector<8x8x32xf32>
    %c0_4 = arith.constant 0 : index
    %c0_5 = arith.constant 0 : index
    %c0_6 = arith.constant 0 : index
    %c0_7 = arith.constant 0 : index
    %c32 = arith.constant 32 : index
    %2 = vector.load %arg2[%c0_4, %c0_5, %c0_6, %c0_7, %c32] : memref<1x8x2x8x64xf32, #tpu.memory_space<vmem>>, vector<1x8x1x8x32xf32>
    %3 = vector.shape_cast %2 : vector<1x8x1x8x32xf32> to vector<8x8x32xf32>
    %4 = arith.maximumf %1, %3 : vector<8x8x32xf32>
    %c0_8 = arith.constant 0 : index
    %c0_9 = arith.constant 0 : index
    %c1 = arith.constant 1 : index
    %c0_10 = arith.constant 0 : index
    %c0_11 = arith.constant 0 : index
    %5 = vector.load %arg2[%c0_8, %c0_9, %c1, %c0_10, %c0_11] : memref<1x8x2x8x64xf32, #tpu.memory_space<vmem>>, vector<1x8x1x8x32xf32>
    %6 = vector.shape_cast %5 : vector<1x8x1x8x32xf32> to vector<8x8x32xf32>
    %7 = arith.maximumf %4, %6 : vector<8x8x32xf32>
    %c0_12 = arith.constant 0 : index
    %c0_13 = arith.constant 0 : index
    %c1_14 = arith.constant 1 : index
    %c0_15 = arith.constant 0 : index
    %c32_16 = arith.constant 32 : index
    %8 = vector.load %arg2[%c0_12, %c0_13, %c1_14, %c0_15, %c32_16] : memref<1x8x2x8x64xf32, #tpu.memory_space<vmem>>, vector<1x8x1x8x32xf32>
    %9 = vector.shape_cast %8 : vector<1x8x1x8x32xf32> to vector<8x8x32xf32>
    %10 = arith.maximumf %7, %9 : vector<8x8x32xf32>
    %cst = arith.constant 0.000000e+00 : f32
    %11 = vector.broadcast %cst : f32 to vector<10x10x48xf32>
    %c0_17 = arith.constant 0 : index
    %c0_18 = arith.constant 0 : index
    %c0_19 = arith.constant 0 : index
    %12 = vector.load %arg11[%c0_17, %c0_18, %c0_19] : memref<10x10x48xf32, #tpu.memory_space<vmem>>, vector<10x10x48xf32>
    tpu.vector_store %arg11[%c0_17, %c0_18, %c0_19], %11 {strides = array<i32>} : memref<10x10x48xf32, #tpu.memory_space<vmem>>, vector<10x10x48xf32>,
    %c0_20 = arith.constant 0 : index
    %c0_21 = arith.constant 0 : index
    %c0_22 = arith.constant 0 : index
    %c0_23 = arith.constant 0 : index
    %13 = vector.load %arg1[%c0_20, %c0_21, %c0_22, %c0_23] : memref<1x8x8x16xf32, #tpu.memory_space<vmem>>, vector<1x8x8x16xf32>
    %14 = vector.shape_cast %13 : vector<1x8x8x16xf32> to vector<8x8x16xf32>
    %c1_24 = arith.constant 1 : index
    %c1_25 = arith.constant 1 : index
    %c0_26 = arith.constant 0 : index
    %15 = vector.load %arg11[%c1_24, %c1_25, %c0_26] : memref<10x10x48xf32, #tpu.memory_space<vmem>>, vector<8x8x16xf32>
    tpu.vector_store %arg11[%c1_24, %c1_25, %c0_26], %14 {strides = array<i32>} : memref<10x10x48xf32, #tpu.memory_space<vmem>>, vector<8x8x16xf32>,
    %c1_27 = arith.constant 1 : index
    %c1_28 = arith.constant 1 : index
    %c16 = arith.constant 16 : index
    %16 = vector.load %arg11[%c1_27, %c1_28, %c16] : memref<10x10x48xf32, #tpu.memory_space<vmem>>, vector<8x8x32xf32>
    tpu.vector_store %arg11[%c1_27, %c1_28, %c16], %10 {strides = array<i32>} : memref<10x10x48xf32, #tpu.memory_space<vmem>>, vector<8x8x32xf32>,
    %c0_29 = arith.constant 0 : index
    %c0_30 = arith.constant 0 : index
    %c0_31 = arith.constant 0 : index
    %17 = vector.load %arg11[%c0_29, %c0_30, %c0_31] : memref<10x10x48xf32, #tpu.memory_space<vmem>>, vector<8x8x48xf32>
    %18 = vector.shape_cast %17 : vector<8x8x48xf32> to vector<64x48xf32>
    %c0_32 = arith.constant 0 : index
    %c0_33 = arith.constant 0 : index
    %c0_34 = arith.constant 0 : index
    %19 = vector.load %arg3[%c0_32, %c0_33, %c0_34] : memref<9x48x32xf32, #tpu.memory_space<vmem>>, vector<1x48x32xf32>
    %20 = vector.shape_cast %19 : vector<1x48x32xf32> to vector<48x32xf32>
    %cst_35 = arith.constant dense<0.000000e+00> : vector<64x32xf32>
    %21 = tpu.matmul %18, %20, %cst_35 {dimension_numbers = #tpu.dot_dimension_numbers<[1], [0], [0], [1], [0, 0, 1, 1], [], []>} : vector<64x48xf32>, vector<48x32xf32>, vector<64x32xf32> -> vector<64x32xf32>
    %c0_36 = arith.constant 0 : index
    %c1_37 = arith.constant 1 : index
    %c0_38 = arith.constant 0 : index
    %22 = vector.load %arg11[%c0_36, %c1_37, %c0_38] : memref<10x10x48xf32, #tpu.memory_space<vmem>>, vector<8x8x48xf32>
    %23 = vector.shape_cast %22 : vector<8x8x48xf32> to vector<64x48xf32>
    %c1_39 = arith.constant 1 : index
    %c0_40 = arith.constant 0 : index
    %c0_41 = arith.constant 0 : index
    %24 = vector.load %arg3[%c1_39, %c0_40, %c0_41] : memref<9x48x32xf32, #tpu.memory_space<vmem>>, vector<1x48x32xf32>
    %25 = vector.shape_cast %24 : vector<1x48x32xf32> to vector<48x32xf32>
    %cst_42 = arith.constant dense<0.000000e+00> : vector<64x32xf32>
    %26 = tpu.matmul %23, %25, %cst_42 {dimension_numbers = #tpu.dot_dimension_numbers<[1], [0], [0], [1], [0, 0, 1, 1], [], []>} : vector<64x48xf32>, vector<48x32xf32>, vector<64x32xf32> -> vector<64x32xf32>
    %27 = arith.addf %21, %26 : vector<64x32xf32>
    %c0_43 = arith.constant 0 : index
    %c2 = arith.constant 2 : index
    %c0_44 = arith.constant 0 : index
    %28 = vector.load %arg11[%c0_43, %c2, %c0_44] : memref<10x10x48xf32, #tpu.memory_space<vmem>>, vector<8x8x48xf32>
    %29 = vector.shape_cast %28 : vector<8x8x48xf32> to vector<64x48xf32>
    %c2_45 = arith.constant 2 : index
    %c0_46 = arith.constant 0 : index
    %c0_47 = arith.constant 0 : index
    %30 = vector.load %arg3[%c2_45, %c0_46, %c0_47] : memref<9x48x32xf32, #tpu.memory_space<vmem>>, vector<1x48x32xf32>
    %31 = vector.shape_cast %30 : vector<1x48x32xf32> to vector<48x32xf32>
    %cst_48 = arith.constant dense<0.000000e+00> : vector<64x32xf32>
    %32 = tpu.matmul %29, %31, %cst_48 {dimension_numbers = #tpu.dot_dimension_numbers<[1], [0], [0], [1], [0, 0, 1, 1], [], []>} : vector<64x48xf32>, vector<48x32xf32>, vector<64x32xf32> -> vector<64x32xf32>
    %33 = arith.addf %27, %32 : vector<64x32xf32>
    %c1_49 = arith.constant 1 : index
    %c0_50 = arith.constant 0 : index
    %c0_51 = arith.constant 0 : index
    %34 = vector.load %arg11[%c1_49, %c0_50, %c0_51] : memref<10x10x48xf32, #tpu.memory_space<vmem>>, vector<8x8x48xf32>
    %35 = vector.shape_cast %34 : vector<8x8x48xf32> to vector<64x48xf32>
    %c3 = arith.constant 3 : index
    %c0_52 = arith.constant 0 : index
    %c0_53 = arith.constant 0 : index
    %36 = vector.load %arg3[%c3, %c0_52, %c0_53] : memref<9x48x32xf32, #tpu.memory_space<vmem>>, vector<1x48x32xf32>
    %37 = vector.shape_cast %36 : vector<1x48x32xf32> to vector<48x32xf32>
    %cst_54 = arith.constant dense<0.000000e+00> : vector<64x32xf32>
    %38 = tpu.matmul %35, %37, %cst_54 {dimension_numbers = #tpu.dot_dimension_numbers<[1], [0], [0], [1], [0, 0, 1, 1], [], []>} : vector<64x48xf32>, vector<48x32xf32>, vector<64x32xf32> -> vector<64x32xf32>
    %39 = arith.addf %33, %38 : vector<64x32xf32>
    %c1_55 = arith.constant 1 : index
    %c1_56 = arith.constant 1 : index
    %c0_57 = arith.constant 0 : index
    %40 = vector.load %arg11[%c1_55, %c1_56, %c0_57] : memref<10x10x48xf32, #tpu.memory_space<vmem>>, vector<8x8x48xf32>
    %41 = vector.shape_cast %40 : vector<8x8x48xf32> to vector<64x48xf32>
    %c4 = arith.constant 4 : index
    %c0_58 = arith.constant 0 : index
    %c0_59 = arith.constant 0 : index
    %42 = vector.load %arg3[%c4, %c0_58, %c0_59] : memref<9x48x32xf32, #tpu.memory_space<vmem>>, vector<1x48x32xf32>
    %43 = vector.shape_cast %42 : vector<1x48x32xf32> to vector<48x32xf32>
    %cst_60 = arith.constant dense<0.000000e+00> : vector<64x32xf32>
    %44 = tpu.matmul %41, %43, %cst_60 {dimension_numbers = #tpu.dot_dimension_numbers<[1], [0], [0], [1], [0, 0, 1, 1], [], []>} : vector<64x48xf32>, vector<48x32xf32>, vector<64x32xf32> -> vector<64x32xf32>
    %45 = arith.addf %39, %44 : vector<64x32xf32>
    %c1_61 = arith.constant 1 : index
    %c2_62 = arith.constant 2 : index
    %c0_63 = arith.constant 0 : index
    %46 = vector.load %arg11[%c1_61, %c2_62, %c0_63] : memref<10x10x48xf32, #tpu.memory_space<vmem>>, vector<8x8x48xf32>
    %47 = vector.shape_cast %46 : vector<8x8x48xf32> to vector<64x48xf32>
    %c5 = arith.constant 5 : index
    %c0_64 = arith.constant 0 : index
    %c0_65 = arith.constant 0 : index
    %48 = vector.load %arg3[%c5, %c0_64, %c0_65] : memref<9x48x32xf32, #tpu.memory_space<vmem>>, vector<1x48x32xf32>
    %49 = vector.shape_cast %48 : vector<1x48x32xf32> to vector<48x32xf32>
    %cst_66 = arith.constant dense<0.000000e+00> : vector<64x32xf32>
    %50 = tpu.matmul %47, %49, %cst_66 {dimension_numbers = #tpu.dot_dimension_numbers<[1], [0], [0], [1], [0, 0, 1, 1], [], []>} : vector<64x48xf32>, vector<48x32xf32>, vector<64x32xf32> -> vector<64x32xf32>
    %51 = arith.addf %45, %50 : vector<64x32xf32>
    %c2_67 = arith.constant 2 : index
    %c0_68 = arith.constant 0 : index
    %c0_69 = arith.constant 0 : index
    %52 = vector.load %arg11[%c2_67, %c0_68, %c0_69] : memref<10x10x48xf32, #tpu.memory_space<vmem>>, vector<8x8x48xf32>
    %53 = vector.shape_cast %52 : vector<8x8x48xf32> to vector<64x48xf32>
    %c6 = arith.constant 6 : index
    %c0_70 = arith.constant 0 : index
    %c0_71 = arith.constant 0 : index
    %54 = vector.load %arg3[%c6, %c0_70, %c0_71] : memref<9x48x32xf32, #tpu.memory_space<vmem>>, vector<1x48x32xf32>
    %55 = vector.shape_cast %54 : vector<1x48x32xf32> to vector<48x32xf32>
    %cst_72 = arith.constant dense<0.000000e+00> : vector<64x32xf32>
    %56 = tpu.matmul %53, %55, %cst_72 {dimension_numbers = #tpu.dot_dimension_numbers<[1], [0], [0], [1], [0, 0, 1, 1], [], []>} : vector<64x48xf32>, vector<48x32xf32>, vector<64x32xf32> -> vector<64x32xf32>
    %57 = arith.addf %51, %56 : vector<64x32xf32>
    %c2_73 = arith.constant 2 : index
    %c1_74 = arith.constant 1 : index
    %c0_75 = arith.constant 0 : index
    %58 = vector.load %arg11[%c2_73, %c1_74, %c0_75] : memref<10x10x48xf32, #tpu.memory_space<vmem>>, vector<8x8x48xf32>
    %59 = vector.shape_cast %58 : vector<8x8x48xf32> to vector<64x48xf32>
    %c7 = arith.constant 7 : index
    %c0_76 = arith.constant 0 : index
    %c0_77 = arith.constant 0 : index
    %60 = vector.load %arg3[%c7, %c0_76, %c0_77] : memref<9x48x32xf32, #tpu.memory_space<vmem>>, vector<1x48x32xf32>
    %61 = vector.shape_cast %60 : vector<1x48x32xf32> to vector<48x32xf32>
    %cst_78 = arith.constant dense<0.000000e+00> : vector<64x32xf32>
    %62 = tpu.matmul %59, %61, %cst_78 {dimension_numbers = #tpu.dot_dimension_numbers<[1], [0], [0], [1], [0, 0, 1, 1], [], []>} : vector<64x48xf32>, vector<48x32xf32>, vector<64x32xf32> -> vector<64x32xf32>
    %63 = arith.addf %57, %62 : vector<64x32xf32>
    %c2_79 = arith.constant 2 : index
    %c2_80 = arith.constant 2 : index
    %c0_81 = arith.constant 0 : index
    %64 = vector.load %arg11[%c2_79, %c2_80, %c0_81] : memref<10x10x48xf32, #tpu.memory_space<vmem>>, vector<8x8x48xf32>
    %65 = vector.shape_cast %64 : vector<8x8x48xf32> to vector<64x48xf32>
    %c8 = arith.constant 8 : index
    %c0_82 = arith.constant 0 : index
    %c0_83 = arith.constant 0 : index
    %66 = vector.load %arg3[%c8, %c0_82, %c0_83] : memref<9x48x32xf32, #tpu.memory_space<vmem>>, vector<1x48x32xf32>
    %67 = vector.shape_cast %66 : vector<1x48x32xf32> to vector<48x32xf32>
    %cst_84 = arith.constant dense<0.000000e+00> : vector<64x32xf32>
    %68 = tpu.matmul %65, %67, %cst_84 {dimension_numbers = #tpu.dot_dimension_numbers<[1], [0], [0], [1], [0, 0, 1, 1], [], []>} : vector<64x48xf32>, vector<48x32xf32>, vector<64x32xf32> -> vector<64x32xf32>
    %69 = arith.addf %63, %68 : vector<64x32xf32>
    %c0_85 = arith.constant 0 : index
    %c0_86 = arith.constant 0 : index
    %70 = vector.load %arg4[%c0_85, %c0_86] : memref<1x32xf32, #tpu.memory_space<vmem>>, vector<1x32xf32>
    %71 = vector.broadcast %70 : vector<1x32xf32> to vector<64x32xf32>
    %72 = arith.addf %69, %71 : vector<64x32xf32>
    %cst_87 = arith.constant 0.000000e+00 : f32
    %73 = vector.broadcast %cst_87 : f32 to vector<64x32xf32>
    %74 = arith.maximumf %72, %73 : vector<64x32xf32>
    %cst_88 = arith.constant 0.000000e+00 : f32
    %75 = vector.broadcast %cst_88 : f32 to vector<10x10x32xf32>
    %c0_89 = arith.constant 0 : index
    %c0_90 = arith.constant 0 : index
    %c0_91 = arith.constant 0 : index
    %76 = vector.load %arg12[%c0_89, %c0_90, %c0_91] : memref<10x10x32xf32, #tpu.memory_space<vmem>>, vector<10x10x32xf32>
    tpu.vector_store %arg12[%c0_89, %c0_90, %c0_91], %75 {strides = array<i32>} : memref<10x10x32xf32, #tpu.memory_space<vmem>>, vector<10x10x32xf32>,
    %77 = vector.shape_cast %74 : vector<64x32xf32> to vector<8x8x32xf32>
    %c1_92 = arith.constant 1 : index
    %c1_93 = arith.constant 1 : index
    %c0_94 = arith.constant 0 : index
    %78 = vector.load %arg12[%c1_92, %c1_93, %c0_94] : memref<10x10x32xf32, #tpu.memory_space<vmem>>, vector<8x8x32xf32>
    tpu.vector_store %arg12[%c1_92, %c1_93, %c0_94], %77 {strides = array<i32>} : memref<10x10x32xf32, #tpu.memory_space<vmem>>, vector<8x8x32xf32>,
    %c0_95 = arith.constant 0 : index
    %c0_96 = arith.constant 0 : index
    %c0_97 = arith.constant 0 : index
    %79 = vector.load %arg12[%c0_95, %c0_96, %c0_97] : memref<10x10x32xf32, #tpu.memory_space<vmem>>, vector<8x8x32xf32>
    %80 = vector.shape_cast %79 : vector<8x8x32xf32> to vector<64x32xf32>
    %c0_98 = arith.constant 0 : index
    %c0_99 = arith.constant 0 : index
    %c0_100 = arith.constant 0 : index
    %81 = vector.load %arg5[%c0_98, %c0_99, %c0_100] : memref<9x32x32xf32, #tpu.memory_space<vmem>>, vector<1x32x32xf32>
    %82 = vector.shape_cast %81 : vector<1x32x32xf32> to vector<32x32xf32>
    %cst_101 = arith.constant dense<0.000000e+00> : vector<64x32xf32>
    %83 = tpu.matmul %80, %82, %cst_101 {dimension_numbers = #tpu.dot_dimension_numbers<[1], [0], [0], [1], [0, 0, 1, 1], [], []>} : vector<64x32xf32>, vector<32x32xf32>, vector<64x32xf32> -> vector<64x32xf32>
    %c0_102 = arith.constant 0 : index
    %c1_103 = arith.constant 1 : index
    %c0_104 = arith.constant 0 : index
    %84 = vector.load %arg12[%c0_102, %c1_103, %c0_104] : memref<10x10x32xf32, #tpu.memory_space<vmem>>, vector<8x8x32xf32>
    %85 = vector.shape_cast %84 : vector<8x8x32xf32> to vector<64x32xf32>
    %c1_105 = arith.constant 1 : index
    %c0_106 = arith.constant 0 : index
    %c0_107 = arith.constant 0 : index
    %86 = vector.load %arg5[%c1_105, %c0_106, %c0_107] : memref<9x32x32xf32, #tpu.memory_space<vmem>>, vector<1x32x32xf32>
    %87 = vector.shape_cast %86 : vector<1x32x32xf32> to vector<32x32xf32>
    %cst_108 = arith.constant dense<0.000000e+00> : vector<64x32xf32>
    %88 = tpu.matmul %85, %87, %cst_108 {dimension_numbers = #tpu.dot_dimension_numbers<[1], [0], [0], [1], [0, 0, 1, 1], [], []>} : vector<64x32xf32>, vector<32x32xf32>, vector<64x32xf32> -> vector<64x32xf32>
    %89 = arith.addf %83, %88 : vector<64x32xf32>
    %c0_109 = arith.constant 0 : index
    %c2_110 = arith.constant 2 : index
    %c0_111 = arith.constant 0 : index
    %90 = vector.load %arg12[%c0_109, %c2_110, %c0_111] : memref<10x10x32xf32, #tpu.memory_space<vmem>>, vector<8x8x32xf32>
    %91 = vector.shape_cast %90 : vector<8x8x32xf32> to vector<64x32xf32>
    %c2_112 = arith.constant 2 : index
    %c0_113 = arith.constant 0 : index
    %c0_114 = arith.constant 0 : index
    %92 = vector.load %arg5[%c2_112, %c0_113, %c0_114] : memref<9x32x32xf32, #tpu.memory_space<vmem>>, vector<1x32x32xf32>
    %93 = vector.shape_cast %92 : vector<1x32x32xf32> to vector<32x32xf32>
    %cst_115 = arith.constant dense<0.000000e+00> : vector<64x32xf32>
    %94 = tpu.matmul %91, %93, %cst_115 {dimension_numbers = #tpu.dot_dimension_numbers<[1], [0], [0], [1], [0, 0, 1, 1], [], []>} : vector<64x32xf32>, vector<32x32xf32>, vector<64x32xf32> -> vector<64x32xf32>
    %95 = arith.addf %89, %94 : vector<64x32xf32>
    %c1_116 = arith.constant 1 : index
    %c0_117 = arith.constant 0 : index
    %c0_118 = arith.constant 0 : index
    %96 = vector.load %arg12[%c1_116, %c0_117, %c0_118] : memref<10x10x32xf32, #tpu.memory_space<vmem>>, vector<8x8x32xf32>
    %97 = vector.shape_cast %96 : vector<8x8x32xf32> to vector<64x32xf32>
    %c3_119 = arith.constant 3 : index
    %c0_120 = arith.constant 0 : index
    %c0_121 = arith.constant 0 : index
    %98 = vector.load %arg5[%c3_119, %c0_120, %c0_121] : memref<9x32x32xf32, #tpu.memory_space<vmem>>, vector<1x32x32xf32>
    %99 = vector.shape_cast %98 : vector<1x32x32xf32> to vector<32x32xf32>
    %cst_122 = arith.constant dense<0.000000e+00> : vector<64x32xf32>
    %100 = tpu.matmul %97, %99, %cst_122 {dimension_numbers = #tpu.dot_dimension_numbers<[1], [0], [0], [1], [0, 0, 1, 1], [], []>} : vector<64x32xf32>, vector<32x32xf32>, vector<64x32xf32> -> vector<64x32xf32>
    %101 = arith.addf %95, %100 : vector<64x32xf32>
    %c1_123 = arith.constant 1 : index
    %c1_124 = arith.constant 1 : index
    %c0_125 = arith.constant 0 : index
    %102 = vector.load %arg12[%c1_123, %c1_124, %c0_125] : memref<10x10x32xf32, #tpu.memory_space<vmem>>, vector<8x8x32xf32>
    %103 = vector.shape_cast %102 : vector<8x8x32xf32> to vector<64x32xf32>
    %c4_126 = arith.constant 4 : index
    %c0_127 = arith.constant 0 : index
    %c0_128 = arith.constant 0 : index
    %104 = vector.load %arg5[%c4_126, %c0_127, %c0_128] : memref<9x32x32xf32, #tpu.memory_space<vmem>>, vector<1x32x32xf32>
    %105 = vector.shape_cast %104 : vector<1x32x32xf32> to vector<32x32xf32>
    %cst_129 = arith.constant dense<0.000000e+00> : vector<64x32xf32>
    %106 = tpu.matmul %103, %105, %cst_129 {dimension_numbers = #tpu.dot_dimension_numbers<[1], [0], [0], [1], [0, 0, 1, 1], [], []>} : vector<64x32xf32>, vector<32x32xf32>, vector<64x32xf32> -> vector<64x32xf32>
    %107 = arith.addf %101, %106 : vector<64x32xf32>
    %c1_130 = arith.constant 1 : index
    %c2_131 = arith.constant 2 : index
    %c0_132 = arith.constant 0 : index
    %108 = vector.load %arg12[%c1_130, %c2_131, %c0_132] : memref<10x10x32xf32, #tpu.memory_space<vmem>>, vector<8x8x32xf32>
    %109 = vector.shape_cast %108 : vector<8x8x32xf32> to vector<64x32xf32>
    %c5_133 = arith.constant 5 : index
    %c0_134 = arith.constant 0 : index
    %c0_135 = arith.constant 0 : index
    %110 = vector.load %arg5[%c5_133, %c0_134, %c0_135] : memref<9x32x32xf32, #tpu.memory_space<vmem>>, vector<1x32x32xf32>
    %111 = vector.shape_cast %110 : vector<1x32x32xf32> to vector<32x32xf32>
    %cst_136 = arith.constant dense<0.000000e+00> : vector<64x32xf32>
    %112 = tpu.matmul %109, %111, %cst_136 {dimension_numbers = #tpu.dot_dimension_numbers<[1], [0], [0], [1], [0, 0, 1, 1], [], []>} : vector<64x32xf32>, vector<32x32xf32>, vector<64x32xf32> -> vector<64x32xf32>
    %113 = arith.addf %107, %112 : vector<64x32xf32>
    %c2_137 = arith.constant 2 : index
    %c0_138 = arith.constant 0 : index
    %c0_139 = arith.constant 0 : index
    %114 = vector.load %arg12[%c2_137, %c0_138, %c0_139] : memref<10x10x32xf32, #tpu.memory_space<vmem>>, vector<8x8x32xf32>
    %115 = vector.shape_cast %114 : vector<8x8x32xf32> to vector<64x32xf32>
    %c6_140 = arith.constant 6 : index
    %c0_141 = arith.constant 0 : index
    %c0_142 = arith.constant 0 : index
    %116 = vector.load %arg5[%c6_140, %c0_141, %c0_142] : memref<9x32x32xf32, #tpu.memory_space<vmem>>, vector<1x32x32xf32>
    %117 = vector.shape_cast %116 : vector<1x32x32xf32> to vector<32x32xf32>
    %cst_143 = arith.constant dense<0.000000e+00> : vector<64x32xf32>
    %118 = tpu.matmul %115, %117, %cst_143 {dimension_numbers = #tpu.dot_dimension_numbers<[1], [0], [0], [1], [0, 0, 1, 1], [], []>} : vector<64x32xf32>, vector<32x32xf32>, vector<64x32xf32> -> vector<64x32xf32>
    %119 = arith.addf %113, %118 : vector<64x32xf32>
    %c2_144 = arith.constant 2 : index
    %c1_145 = arith.constant 1 : index
    %c0_146 = arith.constant 0 : index
    %120 = vector.load %arg12[%c2_144, %c1_145, %c0_146] : memref<10x10x32xf32, #tpu.memory_space<vmem>>, vector<8x8x32xf32>
    %121 = vector.shape_cast %120 : vector<8x8x32xf32> to vector<64x32xf32>
    %c7_147 = arith.constant 7 : index
    %c0_148 = arith.constant 0 : index
    %c0_149 = arith.constant 0 : index
    %122 = vector.load %arg5[%c7_147, %c0_148, %c0_149] : memref<9x32x32xf32, #tpu.memory_space<vmem>>, vector<1x32x32xf32>
    %123 = vector.shape_cast %122 : vector<1x32x32xf32> to vector<32x32xf32>
    %cst_150 = arith.constant dense<0.000000e+00> : vector<64x32xf32>
    %124 = tpu.matmul %121, %123, %cst_150 {dimension_numbers = #tpu.dot_dimension_numbers<[1], [0], [0], [1], [0, 0, 1, 1], [], []>} : vector<64x32xf32>, vector<32x32xf32>, vector<64x32xf32> -> vector<64x32xf32>
    %125 = arith.addf %119, %124 : vector<64x32xf32>
    %c2_151 = arith.constant 2 : index
    %c2_152 = arith.constant 2 : index
    %c0_153 = arith.constant 0 : index
    %126 = vector.load %arg12[%c2_151, %c2_152, %c0_153] : memref<10x10x32xf32, #tpu.memory_space<vmem>>, vector<8x8x32xf32>
    %127 = vector.shape_cast %126 : vector<8x8x32xf32> to vector<64x32xf32>
    %c8_154 = arith.constant 8 : index
    %c0_155 = arith.constant 0 : index
    %c0_156 = arith.constant 0 : index
    %128 = vector.load %arg5[%c8_154, %c0_155, %c0_156] : memref<9x32x32xf32, #tpu.memory_space<vmem>>, vector<1x32x32xf32>
    %129 = vector.shape_cast %128 : vector<1x32x32xf32> to vector<32x32xf32>
    %cst_157 = arith.constant dense<0.000000e+00> : vector<64x32xf32>
    %130 = tpu.matmul %127, %129, %cst_157 {dimension_numbers = #tpu.dot_dimension_numbers<[1], [0], [0], [1], [0, 0, 1, 1], [], []>} : vector<64x32xf32>, vector<32x32xf32>, vector<64x32xf32> -> vector<64x32xf32>
    %131 = arith.addf %125, %130 : vector<64x32xf32>
    %c0_158 = arith.constant 0 : index
    %c0_159 = arith.constant 0 : index
    %132 = vector.load %arg6[%c0_158, %c0_159] : memref<1x32xf32, #tpu.memory_space<vmem>>, vector<1x32xf32>
    %133 = vector.broadcast %132 : vector<1x32xf32> to vector<64x32xf32>
    %134 = arith.addf %131, %133 : vector<64x32xf32>
    %cst_160 = arith.constant 0.000000e+00 : f32
    %135 = vector.broadcast %cst_160 : f32 to vector<64x32xf32>
    %136 = arith.maximumf %134, %135 : vector<64x32xf32>
    %137 = vector.shape_cast %136 : vector<64x32xf32> to vector<8x8x32xf32>
    %c0_161 = arith.constant 0 : index
    %c0_162 = arith.constant 0 : index
    %c0_163 = arith.constant 0 : index
    %c0_164 = arith.constant 0 : index
    %138 = vector.load %arg9[%c0_161, %c0_162, %c0_163, %c0_164] : memref<1x8x8x32xf32, #tpu.memory_space<vmem>>, vector<1x8x8x32xf32>
    %139 = vector.shape_cast %138 : vector<1x8x8x32xf32> to vector<8x8x32xf32>
    %140 = vector.shape_cast %137 : vector<8x8x32xf32> to vector<1x8x8x32xf32>
    tpu.vector_store %arg9[%c0_161, %c0_162, %c0_163, %c0_164], %140 {strides = array<i32>} : memref<1x8x8x32xf32, #tpu.memory_space<vmem>>, vector<1x8x8x32xf32>,
    %c0_165 = arith.constant 0 : index
    %c0_166 = arith.constant 0 : index
    %141 = vector.load %arg7[%c0_165, %c0_166] : memref<32x32xf32, #tpu.memory_space<vmem>>, vector<32x32xf32>
    %cst_167 = arith.constant dense<0.000000e+00> : vector<64x32xf32>
    %142 = tpu.matmul %136, %141, %cst_167 {dimension_numbers = #tpu.dot_dimension_numbers<[1], [0], [0], [1], [0, 0, 1, 1], [], []>} : vector<64x32xf32>, vector<32x32xf32>, vector<64x32xf32> -> vector<64x32xf32>
    %c0_168 = arith.constant 0 : index
    %c0_169 = arith.constant 0 : index
    %143 = vector.load %arg8[%c0_168, %c0_169] : memref<1x32xf32, #tpu.memory_space<vmem>>, vector<1x32xf32>
    %144 = vector.broadcast %143 : vector<1x32xf32> to vector<64x32xf32>
    %145 = arith.addf %142, %144 : vector<64x32xf32>
    %146 = vector.shape_cast %145 : vector<64x32xf32> to vector<8x8x32xf32>
    %c0_170 = arith.constant 0 : index
    %c0_171 = arith.constant 0 : index
    %c0_172 = arith.constant 0 : index
    %c0_173 = arith.constant 0 : index
    %c0_174 = arith.constant 0 : index
    %147 = vector.load %arg2[%c0_170, %c0_171, %c0_172, %c0_173, %c0_174] : memref<1x8x2x8x64xf32, #tpu.memory_space<vmem>>, vector<1x8x1x8x32xf32>
    %148 = vector.shape_cast %147 : vector<1x8x1x8x32xf32> to vector<8x8x32xf32>
    %149 = arith.addf %148, %146 : vector<8x8x32xf32>
    %c0_175 = arith.constant 0 : index
    %c0_176 = arith.constant 0 : index
    %c0_177 = arith.constant 0 : index
    %c0_178 = arith.constant 0 : index
    %c0_179 = arith.constant 0 : index
    %150 = vector.load %arg10[%c0_175, %c0_176, %c0_177, %c0_178, %c0_179] : memref<1x8x2x8x64xf32, #tpu.memory_space<vmem>>, vector<1x8x1x8x32xf32>
    %151 = vector.shape_cast %150 : vector<1x8x1x8x32xf32> to vector<8x8x32xf32>
    %152 = vector.shape_cast %149 : vector<8x8x32xf32> to vector<1x8x1x8x32xf32>
    tpu.vector_store %arg10[%c0_175, %c0_176, %c0_177, %c0_178, %c0_179], %152 {strides = array<i32>} : memref<1x8x2x8x64xf32, #tpu.memory_space<vmem>>, vector<1x8x1x8x32xf32>,
    %c0_180 = arith.constant 0 : index
    %c0_181 = arith.constant 0 : index
    %c0_182 = arith.constant 0 : index
    %c0_183 = arith.constant 0 : index
    %c32_184 = arith.constant 32 : index
    %153 = vector.load %arg2[%c0_180, %c0_181, %c0_182, %c0_183, %c32_184] : memref<1x8x2x8x64xf32, #tpu.memory_space<vmem>>, vector<1x8x1x8x32xf32>
    %154 = vector.shape_cast %153 : vector<1x8x1x8x32xf32> to vector<8x8x32xf32>
    %155 = arith.addf %154, %146 : vector<8x8x32xf32>
    %c0_185 = arith.constant 0 : index
    %c0_186 = arith.constant 0 : index
    %c0_187 = arith.constant 0 : index
    %c0_188 = arith.constant 0 : index
    %c32_189 = arith.constant 32 : index
    %156 = vector.load %arg10[%c0_185, %c0_186, %c0_187, %c0_188, %c32_189] : memref<1x8x2x8x64xf32, #tpu.memory_space<vmem>>, vector<1x8x1x8x32xf32>
    %157 = vector.shape_cast %156 : vector<1x8x1x8x32xf32> to vector<8x8x32xf32>
    %158 = vector.shape_cast %155 : vector<8x8x32xf32> to vector<1x8x1x8x32xf32>
    tpu.vector_store %arg10[%c0_185, %c0_186, %c0_187, %c0_188, %c32_189], %158 {strides = array<i32>} : memref<1x8x2x8x64xf32, #tpu.memory_space<vmem>>, vector<1x8x1x8x32xf32>,
    %c0_190 = arith.constant 0 : index
    %c0_191 = arith.constant 0 : index
    %c1_192 = arith.constant 1 : index
    %c0_193 = arith.constant 0 : index
    %c0_194 = arith.constant 0 : index
    %159 = vector.load %arg2[%c0_190, %c0_191, %c1_192, %c0_193, %c0_194] : memref<1x8x2x8x64xf32, #tpu.memory_space<vmem>>, vector<1x8x1x8x32xf32>
    %160 = vector.shape_cast %159 : vector<1x8x1x8x32xf32> to vector<8x8x32xf32>
    %161 = arith.addf %160, %146 : vector<8x8x32xf32>
    %c0_195 = arith.constant 0 : index
    %c0_196 = arith.constant 0 : index
    %c1_197 = arith.constant 1 : index
    %c0_198 = arith.constant 0 : index
    %c0_199 = arith.constant 0 : index
    %162 = vector.load %arg10[%c0_195, %c0_196, %c1_197, %c0_198, %c0_199] : memref<1x8x2x8x64xf32, #tpu.memory_space<vmem>>, vector<1x8x1x8x32xf32>
    %163 = vector.shape_cast %162 : vector<1x8x1x8x32xf32> to vector<8x8x32xf32>
    %164 = vector.shape_cast %161 : vector<8x8x32xf32> to vector<1x8x1x8x32xf32>
    tpu.vector_store %arg10[%c0_195, %c0_196, %c1_197, %c0_198, %c0_199], %164 {strides = array<i32>} : memref<1x8x2x8x64xf32, #tpu.memory_space<vmem>>, vector<1x8x1x8x32xf32>,
    %c0_200 = arith.constant 0 : index
    %c0_201 = arith.constant 0 : index
    %c1_202 = arith.constant 1 : index
    %c0_203 = arith.constant 0 : index
    %c32_204 = arith.constant 32 : index
    %165 = vector.load %arg2[%c0_200, %c0_201, %c1_202, %c0_203, %c32_204] : memref<1x8x2x8x64xf32, #tpu.memory_space<vmem>>, vector<1x8x1x8x32xf32>
    %166 = vector.shape_cast %165 : vector<1x8x1x8x32xf32> to vector<8x8x32xf32>
    %167 = arith.addf %166, %146 : vector<8x8x32xf32>
    %c0_205 = arith.constant 0 : index
    %c0_206 = arith.constant 0 : index
    %c1_207 = arith.constant 1 : index
    %c0_208 = arith.constant 0 : index
    %c32_209 = arith.constant 32 : index
    %168 = vector.load %arg10[%c0_205, %c0_206, %c1_207, %c0_208, %c32_209] : memref<1x8x2x8x64xf32, #tpu.memory_space<vmem>>, vector<1x8x1x8x32xf32>
    %169 = vector.shape_cast %168 : vector<1x8x1x8x32xf32> to vector<8x8x32xf32>
    %170 = vector.shape_cast %167 : vector<8x8x32xf32> to vector<1x8x1x8x32xf32>
    tpu.vector_store %arg10[%c0_205, %c0_206, %c1_207, %c0_208, %c32_209], %170 {strides = array<i32>} : memref<1x8x2x8x64xf32, #tpu.memory_space<vmem>>, vector<1x8x1x8x32xf32>,
    return
  }
  func.func @transform_0(%arg0: i32) -> (i32, i32, i32, i32) {
    %c0_i32 = arith.constant 0 : i32
    %c0_i32_0 = arith.constant 0 : i32
    %c0_i32_1 = arith.constant 0 : i32
    %c0_i32_2 = arith.constant 0 : i32
    return %arg0, %c0_i32, %c0_i32_0, %c0_i32_1 : i32, i32, i32, i32
  }
  func.func @transform_1(%arg0: i32) -> (i32, i32, i32, i32, i32) {
    %c0_i32 = arith.constant 0 : i32
    %c0_i32_0 = arith.constant 0 : i32
    %c0_i32_1 = arith.constant 0 : i32
    %c0_i32_2 = arith.constant 0 : i32
    %c0_i32_3 = arith.constant 0 : i32
    return %arg0, %c0_i32, %c0_i32_0, %c0_i32_1, %c0_i32_2 : i32, i32, i32, i32, i32
  }
  func.func @transform_2(%arg0: i32) -> (i32, i32, i32) {
    %c0_i32 = arith.constant 0 : i32
    %c0_i32_0 = arith.constant 0 : i32
    %c0_i32_1 = arith.constant 0 : i32
    %c0_i32_2 = arith.constant 0 : i32
    return %c0_i32, %c0_i32_0, %c0_i32_1 : i32, i32, i32
  }
  func.func @transform_3(%arg0: i32) -> (i32, i32) {
    %c0_i32 = arith.constant 0 : i32
    %c0_i32_0 = arith.constant 0 : i32
    %c0_i32_1 = arith.constant 0 : i32
    return %c0_i32, %c0_i32_0 : i32, i32
  }
  func.func @transform_4(%arg0: i32) -> (i32, i32, i32) {
    %c0_i32 = arith.constant 0 : i32
    %c0_i32_0 = arith.constant 0 : i32
    %c0_i32_1 = arith.constant 0 : i32
    %c0_i32_2 = arith.constant 0 : i32
    return %c0_i32, %c0_i32_0, %c0_i32_1 : i32, i32, i32
  }
  func.func @transform_5(%arg0: i32) -> (i32, i32) {
    %c0_i32 = arith.constant 0 : i32
    %c0_i32_0 = arith.constant 0 : i32
    %c0_i32_1 = arith.constant 0 : i32
    return %c0_i32, %c0_i32_0 : i32, i32
  }
  func.func @transform_6(%arg0: i32) -> (i32, i32) {
    %c0_i32 = arith.constant 0 : i32
    %c0_i32_0 = arith.constant 0 : i32
    %c0_i32_1 = arith.constant 0 : i32
    return %c0_i32, %c0_i32_0 : i32, i32
  }
  func.func @transform_7(%arg0: i32) -> (i32, i32) {
    %c0_i32 = arith.constant 0 : i32
    %c0_i32_0 = arith.constant 0 : i32
    %c0_i32_1 = arith.constant 0 : i32
    return %c0_i32, %c0_i32_0 : i32, i32
  }
  func.func @transform_8(%arg0: i32) -> (i32, i32, i32, i32) {
    %c0_i32 = arith.constant 0 : i32
    %c0_i32_0 = arith.constant 0 : i32
    %c0_i32_1 = arith.constant 0 : i32
    %c0_i32_2 = arith.constant 0 : i32
    return %arg0, %c0_i32, %c0_i32_0, %c0_i32_1 : i32, i32, i32, i32
  }
  func.func @transform_9(%arg0: i32) -> (i32, i32, i32, i32, i32) {
    %c0_i32 = arith.constant 0 : i32
    %c0_i32_0 = arith.constant 0 : i32
    %c0_i32_1 = arith.constant 0 : i32
    %c0_i32_2 = arith.constant 0 : i32
    %c0_i32_3 = arith.constant 0 : i32
    return %arg0, %c0_i32, %c0_i32_0, %c0_i32_1, %c0_i32_2 : i32, i32, i32, i32, i32
  }
}

</mosaic_0001>

<bundles_post_ra>
// kernel: frru_forward.1
= control target key start
LH: loop header
LB: loop body
LE: loop exit
PB: predicated region body
PF: predicated region fallthrough
CT: control target
= control target key end

     0   :  { %s4259_s0 = inlined_call_operand.vmem [shape: f32[2,8,8,16], index: 0, kind: input, shape index: {}]   ;;  %s4260_s1 = inlined_call_operand.vmem [shape: f32[2,8,2,8,64], index: 1, kind: input, shape index: {}, may-alias: {1,9}]   ;;  %s4261_s2 = inlined_call_operand.vmem [shape: f32[9,48,32], index: 2, kind: input, shape index: {}]   ;;  %s4262_s3 = inlined_call_operand.vmem [shape: f32[1,32], index: 3, kind: input, shape index: {}]   ;;  %s4263_s4 = inlined_call_operand.vmem [shape: f32[9,32,32], index: 4, kind: input, shape index: {}]   ;;  %s4264_s5 = inlined_call_operand.vmem [shape: f32[1,32], index: 5, kind: input, shape index: {}]   ;;  %s4265_s6 = inlined_call_operand.vmem [shape: f32[32,32], index: 6, kind: input, shape index: {}]   ;;  %s4266_s7 = inlined_call_operand.vmem [shape: f32[1,32], index: 7, kind: input, shape index: {}]   ;;  %s4267_s8 = inlined_call_operand.hbm [shape: f32[2,8,8,32], index: 8, kind: output, shape index: {0}]   ;;  %s4268_s9 = inlined_call_operand.vmem [shape: f32[2,8,2,8,64], index: 9, kind: output, shape index: {1}, may-alias: {1,9}]  }
   0x1   :  { %4271 = sst [smem:[#allocation7_spill]] %s4259_s0 }
   0x2   :  { %4272 = sst [smem:[#allocation8_spill]] %s4260_s1 }
   0x3   :  { %4273 = sst [smem:[#allocation9_spill]] %s4261_s2 }
   0x4   :  { %4274 = sst [smem:[#allocation10_spill]] %s4262_s3 }
   0x5   :  { %15 = vsyncpa [#allocation5], 0 }
   0x6   :  { %17 = vsyncpa [#allocation5 + $0x1], 0  ;;  %s2967_s30 = smov 0   ;;  %s2969_s10 = smov 0  }
   0x7   :  { %s2971_s11 = smov 0   ;;  %s2973_s12 = smov 0  }
   0x8 LB: > { %s2988_s13 = sadd.s32 4294967295, %s2909_s12   ;;  %s2489_s14 = sadd.s32 4294967294, %s2909_s12   ;;  %s2909_s12 = sphi %s2973_s12, %s4286_s12   ;;  %s2905_s11 = sphi %s2971_s11, %s4285_s11   ;;  %s2901_s10 = sphi %s2969_s10, %s4284_s10   ;;  %s2897_s30 = sphi %s2967_s30, %s4283_s30  }
   0x9   : > { %s2992_s15 = sadd.s32 1, %s2909_s12   ;;  %s208_s16 = sadd.s32 1, %s2905_s11 }
   0xa   : > { %s205_s17 = ssub.s32 %s2909_s12, %s2992_s15  ;;  %p218_p0 = scmp.ne.s32.totalorder %s2905_s11, %s2901_s10 }
   0xb   : > { %p206_p1 = scmp.eq.s32.totalorder %s205_s17, 0  ;;  %p219_p2 = scmp.eq.s32.totalorder %s2988_s13, 1 }
   0xc   : > { %p224_p3 = scmp.ne.s32.totalorder %s2901_s10, %s2897_s30  ;;  %p225_p4 = scmp.eq.s32.totalorder %s2489_s14, 1 }
   0xd   : > { %s3003_s18 = scalar_select %p206_p1, %s2905_s11, %s208_s16  }
   0xe   : > { %p3005_p5 = por %p219_p2, %p218_p0  ;;  %p3009_p6 = por %p225_p4, %p224_p3 }
   0xf   : > { %p2492_p7 = scmp.ge.s32.totalorder %s2909_s12, 1  ;;  %p303_p8 = scmp.lt.s32.totalorder %s2909_s12, 3 }
  0x11   : > { %p304_p9 = pnand %p2492_p7, %p303_p8 }
  0x12   : > { %p349_p10 = scmp.lt.s32.totalorder (!%p304_p9), %s2988_s13, 1  ;;  %s4277_s1 = sld [smem:[#allocation8_spill]] (!%p304_p9) }
  0x13   : > { %307 = sbr.rel (%p304_p9) target bundleno = 1150 (0x47e), region = 52  ;;  %s2911_s26 = smov (!%p304_p9), 96  }
  0x14   : > { %s4278_s2 = sld [smem:[#allocation9_spill]] (!%p304_p9)  ;;  %s4270_s16 = smov (!%p304_p9), 16  }
  0x15   : > { %s4279_s0 = sld [smem:[#allocation7_spill]] (!%p304_p9)  ;;  %s339_s29 = sand.u32 (!%p304_p9), 1, %s2901_s10  }
  0x16   : > { %s4281_s3 = sld [smem:[#allocation10_spill]] (!%p304_p9)  ;;  %s2367_s23 = scalar_lea.sflag (!%p304_p9), [#allocation5], %s339_s29 }
  0x18   : > { %s3017_s21 = scalar_select %p349_p10, %s2988_s13, 1  ;;  %vm469_vm0 = vcmask 392192   ;;  %vm471_vm1 = vcmask 386048   ;;  %v2912_v29 = vmov 0.0   ;;  %vm500_vm2 = vcmask 130048  }
  0x19   : > { %475 = vst.msk [vmem:[#allocation2 + $0x20] sm:$0xff] %vm469_vm0, %v2912_v29  ;;  %vm541_vm3 = vcmask 392320   ;;  %vm1346_vm4 = vcmask 261120   ;;  %vm1348_vm5 = vcmask 254976  }
  0x1a   : > { %s4269_s22 = sshll.u32 %s3017_s21, 7  ;;  %v2513_v22 = vld [vmem:[%s4278_s2 + $0x58] sm:$0xff]  ;;  %v3082_v23 = vld [vmem:[%s4278_s2 + $0x28] sm:$0xff]  ;;  %v2512_v27 = vld [vmem:[%s4278_s2 + $0x50] sm:$0xff]  ;;  %476 = vst.msk [vmem:[#allocation2 + $0x28] sm:$0x3] %vm471_vm1, %v2912_v29 }
  0x1b   : > { %s3025_s25 = scalar_lea.vmem %s4277_s1, %s4269_s22  ;;  %v3087_v24 = vld [vmem:[%s4278_s2 + $0x88] sm:$0xff]  ;;  %2781 = vmatpush.msra.mxu3 %v2513_v22  ;;  %2787 = vmatpush.msra.mxu1 %v3082_v23  ;;  %v3096_v28 = vld [vmem:[%s4278_s2 + $0x20] sm:$0xff]  ;;  %470 = vst.msk [vmem:[#allocation2] sm:$0xff] %vm469_vm0, %v2912_v29  ;;  %s2777_s17 = sshll.u32 %s3017_s21, 6  ;;  %v561_v60 = vld [vmem:[%s4278_s2 + $0x18] sm:$0xff] }
  0x1c   : > { %v366_v0 = vld [vmem:[%s3025_s25 + $0x20] sm:$0xff]  ;;  %v365_v1 = vld [vmem:[%s3025_s25 + $0x10] sm:$0xff]  ;;  %v2502_v3 = vld [vmem:[%s3025_s25 + $0x28] sm:$0xff]  ;;  %2793 = vmatpush.msra.mxu2 %v3087_v24  ;;  %613 = vmatpush.msra.mxu0 %v2513_v22  ;;  %472 = vst.msk [vmem:[#allocation2 + $0x8] sm:$0x3] %vm471_vm1, %v2912_v29  ;;  %s3174_s27 = scalar_lea.vmem %s4279_s0, %s2777_s17  ;;  %s4280_s17 = smov 16  }
  0x1d   : > { %384 = vrot.lane.b32.xlu1 %v366_v0, %s2911_s26  ;;  %382 = vrot.lane.b32.xlu0 %v365_v1, %s2911_s26  ;;  %v3032_v2 = vld [vmem:[%s3025_s25] sm:$0xff]  ;;  %v2501_v4 = vld [vmem:[%s3025_s25 + $0x18] sm:$0xff]  ;;  %473 = vst.msk [vmem:[#allocation2 + $0x10] sm:$0xff] %vm469_vm0, %v2912_v29  ;;  %s4282_s0 = sshll.u32 %s3017_s21, 7  ;;  %s2914_s22 = smov 32  }
  0x1e   : > { %380 = vrot.lane.b32.xlu2 %v3032_v2, %s2911_s26  ;;  %v367_v5 = vld [vmem:[%s3025_s25 + $0x30] sm:$0xff]  ;;  %v2503_v6 = vld [vmem:[%s3025_s25 + $0x38] sm:$0xff]  ;;  %v2500_v7 = vld [vmem:[%s3025_s25 + $0x8] sm:$0xff]  ;;  %2782 = vmatpush.msra.mxu3 %v2512_v27  ;;  %474 = vst.msk [vmem:[#allocation2 + $0x18] sm:$0x3] %vm471_vm1, %v2912_v29  ;;  %s4085_s28 = scalar_lea.vmem %s4268_s9, %s4282_s0  ;;  %s2780_s21 = sshll.u32 %s2988_s13, 6 }
  0x1f   : > { %v3047_v8 = vld [vmem:[%s3025_s25 + $0x40] sm:$0xff]  ;;  %v3052_v9 = vld [vmem:[%s3025_s25 + $0x50] sm:$0xff]  ;;  %v3055_v10 = vld [vmem:[%s3025_s25 + $0x48] sm:$0xff]  ;;  %2788 = vmatpush.msra.mxu1 %v3096_v28  ;;  %614 = vmatpush.msra.mxu0 %v2512_v27  ;;  %477 = vst.msk [vmem:[#allocation2 + $0x30] sm:$0xff] %vm469_vm0, %v2912_v29  ;;  %s2867_s13 = scalar_lea.hbm %s4267_s8, 128 }
  0x20   : > { %v3062_v11 = vld [vmem:[%s3025_s25 + $0x58] sm:$0xff]  ;;  %v3067_v12 = vld [vmem:[%s3025_s25 + $0x60] sm:$0xff]  ;;  %v3070_v13 = vld [vmem:[%s3025_s25 + $0x68] sm:$0xff]  ;;  %478 = vst.msk [vmem:[#allocation2 + $0x38] sm:$0x3] %vm471_vm1, %v2912_v29 }
  0x21   : > { %v3104_v33 = vld [vmem:[%s4278_s2 + $0x80] sm:$0xff]  ;;  %479 = vst.msk [vmem:[#allocation2 + $0x40] sm:$0xff] %vm469_vm0, %v2912_v29  ;;  %v3158_v51 = vld [vmem:[%s3025_s25 + $0x70] sm:$0xff]  ;;  %v3165_v56 = vld [vmem:[%s3025_s25 + $0x78] sm:$0xff]  ;;  %2789 = vmatpush.msra.mxu1 %v561_v60 }
  0x22   : > { %2794 = vmatpush.msra.mxu2 %v3104_v33  ;;  %480 = vst.msk [vmem:[#allocation2 + $0x48] sm:$0x3] %vm471_vm1, %v2912_v29  ;;  %v492_v58 = vld [vmem:[%s3174_s27 + $0x8] sm:$0xff]  ;;  %v2533_v61 = vld [vmem:[%s4278_s2 + $0x78] sm:$0xff]  ;;  %v2510_v62 = vld [vmem:[%s4278_s2 + $0x40] sm:$0xff] }
  0x23   : > { %481 = vst.msk [vmem:[#allocation2 + $0x50] sm:$0xff] %vm469_vm0, %v2912_v29  ;;  %v2511_v59 = vld [vmem:[%s4278_s2 + $0x48] sm:$0xff]  ;;  %v560_v63 = vld [vmem:[%s4278_s2 + $0x10] sm:$0xff]  ;;  %v2577_v22 = vld [vmem:[%s4278_s2 + $0x118] sm:$0xff] }
  0x24   : > { %482 = vst.msk [vmem:[#allocation2 + $0x58] sm:$0x3] %vm471_vm1, %v2912_v29  ;;  %2783 = vmatpush.msra.mxu3 %v2511_v59  ;;  %2795 = vmatpush.msra.mxu2 %v2533_v61 }
  0x25   : > { %441 = vrot.lane.b32.xlu1 %v2502_v3, %s2911_s26  ;;  %439 = vrot.lane.b32.xlu0 %v2501_v4, %s2911_s26  ;;  %483 = vst.msk [vmem:[#allocation2 + $0x60] sm:$0xff] %vm469_vm0, %v2912_v29 }
  0x26   : > { %386 = vrot.lane.b32.xlu2 %v367_v5, %s2911_s26  ;;  %484 = vst.msk [vmem:[#allocation2 + $0x68] sm:$0x3] %vm471_vm1, %v2912_v29  ;;  %615 = vmatpush.msra.mxu0 %v2511_v59  ;;  %v2562_v59 = vld [vmem:[%s4278_s2 + $0xe0] sm:$0xff] }
  0x27   : > { %485 = vst.msk [vmem:[#allocation2 + $0x70] sm:$0xff] %vm469_vm0, %v2912_v29  ;;  %2784 = vmatpush.msra.mxu3 %v2510_v62  ;;  %2790 = vmatpush.msra.mxu1 %v560_v63 }
  0x28   : > { %486 = vst.msk [vmem:[#allocation2 + $0x78] sm:$0x3] %vm471_vm1, %v2912_v29  ;;  %616 = vmatpush.msra.mxu0 %v2510_v62 }
  0x29   : > { %487 = vst.msk [vmem:[#allocation2 + $0x80] sm:$0xff] %vm469_vm0, %v2912_v29 }
  0x2a   : > { %488 = vst.msk [vmem:[#allocation2 + $0x88] sm:$0x3] %vm471_vm1, %v2912_v29 }
  0x2b   : > { %489 = vst.msk [vmem:[#allocation2 + $0x90] sm:$0xff] %vm469_vm0, %v2912_v29 }
  0x2c   : > { %490 = vst.msk [vmem:[#allocation2 + $0x98] sm:$0x3] %vm471_vm1, %v2912_v29 }
  0x2d   : > { %443 = vrot.lane.b32.xlu1 %v2503_v6, %s2911_s26  ;;  %437 = vrot.lane.b32.xlu0 %v2500_v7, %s2911_s26  ;;  %502 = vst.msk [vmem:[#allocation2 + $0x21] sm:$0xff] %vm500_vm2, %v492_v58 }
  0x2e   : > { %388 = vrot.lane.b32.xlu2 %v3047_v8, %s2911_s26  ;;  %1350 = vst.msk [vmem:[#allocation3 + $0x10] sm:$0xff] %vm1346_vm4, %v2912_v29 }
  0x2f   : > { %1347 = vst.msk [vmem:[#allocation3] sm:$0xff] %vm1346_vm4, %v2912_v29 }
  0x30   : > { %1351 = vst.msk [vmem:[#allocation3 + $0x18] sm:$0x3] %vm1348_vm5, %v2912_v29 }
  0x31   : > { %1349 = vst.msk [vmem:[#allocation3 + $0x8] sm:$0x3] %vm1348_vm5, %v2912_v29 }
  0x32   : > { %1352 = vst.msk [vmem:[#allocation3 + $0x20] sm:$0xff] %vm1346_vm4, %v2912_v29 }
  0x33   : > { %1353 = vst.msk [vmem:[#allocation3 + $0x28] sm:$0x3] %vm1348_vm5, %v2912_v29 }
  0x34   : > { %1354 = vst.msk [vmem:[#allocation3 + $0x30] sm:$0xff] %vm1346_vm4, %v2912_v29 }
  0x35   : > { %390 = vrot.lane.b32.xlu1 %v3052_v9, %s2911_s26  ;;  %445 = vrot.lane.b32.xlu0 %v3055_v10, %s2911_s26  ;;  %1355 = vst.msk [vmem:[#allocation3 + $0x38] sm:$0x3] %vm1348_vm5, %v2912_v29 }
  0x36   : > { %447 = vrot.lane.b32.xlu2 %v3062_v11, %s2911_s26  ;;  %1356 = vst.msk [vmem:[#allocation3 + $0x40] sm:$0xff] %vm1346_vm4, %v2912_v29 }
  0x37   : > { %1357 = vst.msk [vmem:[#allocation3 + $0x48] sm:$0x3] %vm1348_vm5, %v2912_v29 }
  0x38   : > { %1358 = vst.msk [vmem:[#allocation3 + $0x50] sm:$0xff] %vm1346_vm4, %v2912_v29 }
  0x39   : > { %1359 = vst.msk [vmem:[#allocation3 + $0x58] sm:$0x3] %vm1348_vm5, %v2912_v29 }
  0x3a   : > { %1360 = vst.msk [vmem:[#allocation3 + $0x60] sm:$0xff] %vm1346_vm4, %v2912_v29 }
  0x3b   : > { %1361 = vst.msk [vmem:[#allocation3 + $0x68] sm:$0x3] %vm1348_vm5, %v2912_v29 }
  0x3c   : > { %1362 = vst.msk [vmem:[#allocation3 + $0x70] sm:$0xff] %vm1346_vm4, %v2912_v29 }
  0x3d   : > { %392 = vrot.lane.b32.xlu0 %v3067_v12, %s2911_s26  ;;  %449 = vrot.lane.b32.xlu1 %v3070_v13, %s2911_s26  ;;  %1363 = vst.msk [vmem:[#allocation3 + $0x78] sm:$0x3] %vm1348_vm5, %v2912_v29 }
  0x3e   : > { %1364 = vst.msk [vmem:[#allocation3 + $0x80] sm:$0xff] %vm1346_vm4, %v2912_v29 }
  0x3f   : > { %1365 = vst.msk [vmem:[#allocation3 + $0x88] sm:$0x3] %vm1348_vm5, %v2912_v29 }
  0x40   : > { %1366 = vst.msk [vmem:[#allocation3 + $0x90] sm:$0xff] %vm1346_vm4, %v2912_v29 }
  0x41   : > { %1367 = vst.msk [vmem:[#allocation3 + $0x98] sm:$0x3] %vm1348_vm5, %v2912_v29 }
  0x78   : > { %v381_v14 = vpop.permute.xlu2 %380 }
  0x79   : > { %v404_v34 = vmax.f32 %v3032_v2, %v381_v14  ;;  %v559_v2 = vld [vmem:[%s4278_s2 + $0x8] sm:$0xff] }
  0x7a   : > { %2791 = vmatpush.msra.mxu1 %v559_v2 }
  0x7b   : > { %v421_v37 = vmax.f32 %v404_v34, %v2500_v7  ;;  %v494_v7 = vld [vmem:[%s3174_s27 + $0x18] sm:$0xff] }
  0x7c   : > { %504 = vst.msk [vmem:[#allocation2 + $0x41] sm:$0xff] %vm500_vm2, %v494_v7  ;;  %v2589_v34 = vld [vmem:[%s4278_s2 + $0x138] sm:$0xff] }
  0x80   : > { %v387_v19 = vpop.permute.xlu2 %386 }
  0x81   : > { %v407_v32 = vmax.f32 %v367_v5, %v387_v19  ;;  %v558_v5 = vld [vmem:[%s4278_s2] sm:$0xff]  ;;  %v497_v19 = vld [vmem:[%s3174_s27 + $0x30] sm:$0xff] }
  0x82   : > { %2792 = vmatpush.msra.mxu1 %v558_v5  ;;  %507 = vst.msk [vmem:[#allocation2 + $0x71] sm:$0xff] %vm500_vm2, %v497_v19  ;;  %v2616_v19 = vld [vmem:[%s4278_s2 + $0x190] sm:$0xff] }
  0x83   : > { %v424_v35 = vmax.f32 %v407_v32, %v2503_v6  ;;  %v2530_v6 = vld [vmem:[%s4278_s2 + $0x60] sm:$0xff]  ;;  %v2547_v32 = vld [vmem:[%s4278_s2 + $0xa8] sm:$0xff] }
  0x84   : > { %1022 = vmatpush.msrb.mxu1 %v2577_v22  ;;  %v2615_v22 = vld [vmem:[%s4278_s2 + $0x188] sm:$0xff] }
  0x88   : > { %v389_v36 = vpop.permute.xlu2 %388 }
  0x89   : > { %v408_v42 = vmax.f32 %v3047_v8, %v389_v36  ;;  %v493_v8 = vld [vmem:[%s3174_s27 + $0x10] sm:$0xff]  ;;  %v2574_v36 = vld [vmem:[%s4278_s2 + $0x100] sm:$0xff] }
  0x8a   : > { %503 = vst.msk [vmem:[#allocation2 + $0x31] sm:$0xff] %vm500_vm2, %v493_v8 }
  0x8b   : > { %v425_v43 = vmax.f32 %v408_v42, %v3055_v10  ;;  %v491_v10 = vld [vmem:[%s3174_s27] sm:$0xff] }
  0x8c   : > { %501 = vst.msk [vmem:[#allocation2 + $0x11] sm:$0xff] %vm500_vm2, %v491_v10 }
  0x8f   : > { %v385_v15 = vpop.permute.xlu1 %384  ;;  %v383_v16 = vpop.permute.xlu0 %382 }
  0x90   : > { %v406_v17 = vmax.f32 %v366_v0, %v385_v15  ;;  %v405_v18 = vmax.f32 %v365_v1, %v383_v16  ;;  %v448_v48 = vpop.permute.xlu2 %447  ;;  %v2532_v0 = vld [vmem:[%s4278_s2 + $0x70] sm:$0xff]  ;;  %v2509_v1 = vld [vmem:[%s4278_s2 + $0x38] sm:$0xff]  ;;  %v495_v16 = vld [vmem:[%s3174_s27 + $0x20] sm:$0xff] }
  0x91   : > { %2796 = vmatpush.msra.mxu2 %v2532_v0  ;;  %2785 = vmatpush.msra.mxu3 %v2509_v1  ;;  %505 = vst.msk [vmem:[#allocation2 + $0x51] sm:$0xff] %vm500_vm2, %v495_v16  ;;  %v2618_v16 = vld [vmem:[%s4278_s2 + $0x1a0] sm:$0xff] }
  0x92   : > { %v423_v20 = vmax.f32 %v406_v17, %v2502_v3  ;;  %v422_v21 = vmax.f32 %v405_v18, %v2501_v4  ;;  %v2531_v3 = vld [vmem:[%s4278_s2 + $0x68] sm:$0xff]  ;;  %v2508_v4 = vld [vmem:[%s4278_s2 + $0x30] sm:$0xff]  ;;  %617 = vmatpush.msra.mxu0 %v2509_v1  ;;  %v2549_v18 = vld [vmem:[%s4278_s2 + $0xb8] sm:$0xff] }
  0x93   : > { %2797 = vmatpush.msra.mxu2 %v2531_v3  ;;  %2786 = vmatpush.msra.mxu3 %v2508_v4  ;;  %v496_v17 = vld [vmem:[%s3174_s27 + $0x28] sm:$0xff]  ;;  %v2560_v1 = vld [vmem:[%s4278_s2 + $0xd0] sm:$0xff] }
  0x94   : > { %618 = vmatpush.msra.mxu0 %v2508_v4  ;;  %506 = vst.msk [vmem:[#allocation2 + $0x61] sm:$0xff] %vm500_vm2, %v496_v17  ;;  %v2558_v4 = vld [vmem:[%s4278_s2 + $0xc0] sm:$0xff]  ;;  %v2603_v17 = vld [vmem:[%s4278_s2 + $0x168] sm:$0xff] }
  0x95   : > { %2798 = vmatpush.msra.mxu2 %v2530_v6  ;;  %846 = vmatpush.msrb.mxu3 %v2549_v18  ;;  %v2602_v18 = vld [vmem:[%s4278_s2 + $0x160] sm:$0xff] }
  0x96   : > { %678 = vmatpush.msrb.mxu0 %v3082_v23  ;;  %v2591_v23 = vld [vmem:[%s4278_s2 + $0x148] sm:$0xff] }
  0x97   : > { %v442_v25 = vpop.permute.xlu1 %441  ;;  %v440_v26 = vpop.permute.xlu0 %439  ;;  %1111 = vmatpush.msrb.mxu2 %v2591_v23  ;;  %v2600_v23 = vld [vmem:[%s4278_s2 + $0x150] sm:$0xff] }
  0x98   : > { %v463_v30 = vmax.f32 %v423_v20, %v442_v25  ;;  %v462_v31 = vmax.f32 %v422_v21, %v440_v26  ;;  %679 = vmatpush.msrb.mxu0 %v3096_v28  ;;  %v2548_v21 = vld [vmem:[%s4278_s2 + $0xb0] sm:$0xff]  ;;  %v2590_v25 = vld [vmem:[%s4278_s2 + $0x140] sm:$0xff] }
  0x99   : > { %847 = vmatpush.msrb.mxu3 %v2548_v21  ;;  %1112 = vmatpush.msrb.mxu2 %v2590_v25  ;;  %v498_v21 = vld [vmem:[%s3174_s27 + $0x38] sm:$0xff] }
  0x9a   : > { %521 = vrot.lane.b32.xlu0 %v463_v30, %s4270_s16  ;;  %519 = vrot.lane.b32.xlu2 %v462_v31, %s4270_s16  ;;  %508 = vst.msk [vmem:[#allocation2 + $0x81] sm:$0xff] %vm500_vm2, %v498_v21 }
  0x9b   : > { %680 = vmatpush.msrb.mxu0 %v561_v60  ;;  %848 = vmatpush.msrb.mxu3 %v2547_v32 }
  0x9c   : > { %1113 = vmatpush.msrb.mxu2 %v2589_v34  ;;  %v1069_v34 = vld [vmem:[#allocation2 + $0x90] sm:$0xff] }
  0x9d   : > { %681 = vmatpush.msrb.mxu0 %v560_v63 }
  0x9f   : > { %v444_v38 = vpop.permute.xlu1 %443  ;;  %v438_v39 = vpop.permute.xlu0 %437  ;;  %682 = vmatpush.msrb.mxu0 %v559_v2 }
  0xa0   : > { %v464_v40 = vmax.f32 %v424_v35, %v444_v38  ;;  %v461_v41 = vmax.f32 %v421_v37, %v438_v39  ;;  %v2546_v35 = vld [vmem:[%s4278_s2 + $0xa0] sm:$0xff]  ;;  %v2588_v37 = vld [vmem:[%s4278_s2 + $0x130] sm:$0xff]  ;;  %v2545_v38 = vld [vmem:[%s4278_s2 + $0x98] sm:$0xff] }
  0xa1   : > { %683 = vmatpush.msrb.mxu0 %v558_v5  ;;  %849 = vmatpush.msrb.mxu3 %v2546_v35  ;;  %v2573_v39 = vld [vmem:[%s4278_s2 + $0xf8] sm:$0xff] }
  0xa2   : > { %517 = vrot.lane.b32.xlu1 %v461_v41, %s4270_s16  ;;  %523 = vrot.lane.b32.xlu2 %v464_v40, %s4270_s16  ;;  %v2587_v40 = vld [vmem:[%s4278_s2 + $0x128] sm:$0xff] }
  0xa3   : > { %1114 = vmatpush.msrb.mxu2 %v2588_v37  ;;  %850 = vmatpush.msrb.mxu3 %v2545_v38 }
  0xa5   : > { %1115 = vmatpush.msrb.mxu2 %v2587_v40 }
  0xa7   : > { %v391_v44 = vpop.permute.xlu1 %390  ;;  %v446_v45 = vpop.permute.xlu0 %445 }
  0xa8   : > { %v409_v46 = vmax.f32 %v3052_v9, %v391_v44  ;;  %v465_v47 = vmax.f32 %v425_v43, %v446_v45  ;;  %v2544_v44 = vld [vmem:[%s4278_s2 + $0x90] sm:$0xff] }
  0xa9   : > { %v2572_v45 = vld [vmem:[%s4278_s2 + $0xf0] sm:$0xff]  ;;  %851 = vmatpush.msrb.mxu3 %v2544_v44 }
  0xaa   : > { %525 = vrot.lane.b32.xlu0 %v465_v47, %s4270_s16  ;;  %v426_v49 = vmax.f32 %v409_v46, %v3062_v11  ;;  %v564_v11 = vld [vmem:[#allocation2 + $0x1] sm:$0xff]  ;;  %v1245_v44 = vld [vmem:[#allocation2 + $0x92] sm:$0xff] }
  0xab   : > { %2514 = vmatmul.msk.f32.vlgmr.msra.gmra.mxu0 %vm469_vm0, %v564_v11  ;;  %v2619_v11 = vld [vmem:[%s4278_s2 + $0x1a8] sm:$0xff] }
  0xac   : > { %v466_v50 = vmax.f32 %v426_v49, %v448_v48  ;;  %758 = vmatpush.msra.mxu0 %v3087_v24  ;;  %v2576_v24 = vld [vmem:[%s4278_s2 + $0x110] sm:$0xff]  ;;  %v2586_v48 = vld [vmem:[%s4278_s2 + $0x120] sm:$0xff] }
  0xad   : > { %1023 = vmatpush.msrb.mxu1 %v2576_v24  ;;  %1116 = vmatpush.msrb.mxu2 %v2586_v48  ;;  %v2614_v24 = vld [vmem:[%s4278_s2 + $0x180] sm:$0xff] }
  0xae   : > { %527 = vrot.lane.b32.xlu1 %v466_v50, %s4270_s16  ;;  %759 = vmatpush.msra.mxu0 %v3104_v33  ;;  %v2575_v33 = vld [vmem:[%s4278_s2 + $0x108] sm:$0xff]  ;;  %v550_v50 = vld [vmem:[#allocation2] sm:$0xff] }
  0xaf   : > { %v393_v52 = vpop.permute.xlu0 %392  ;;  %v450_v54 = vpop.permute.xlu1 %449  ;;  %1024 = vmatpush.msrb.mxu1 %v2575_v33 }
  0xb0   : > { %v410_v53 = vmax.f32 %v3067_v12, %v393_v52  ;;  %760 = vmatpush.msra.mxu0 %v2533_v61  ;;  %v2563_v52 = vld [vmem:[%s4278_s2 + $0xe8] sm:$0xff] }
  0xb1   : > { %1025 = vmatpush.msrb.mxu1 %v2574_v36 }
  0xb2   : > { %394 = vrot.lane.b32.xlu0 %v3158_v51, %s2911_s26  ;;  %v427_v55 = vmax.f32 %v410_v53, %v3070_v13  ;;  %761 = vmatpush.msra.mxu0 %v2532_v0 }
  0xb3   : > { %1026 = vmatpush.msrb.mxu1 %v2573_v39 }
  0xb4   : > { %v467_v57 = vmax.f32 %v427_v55, %v450_v54  ;;  %762 = vmatpush.msra.mxu0 %v2531_v3  ;;  %v2559_v3 = vld [vmem:[%s4278_s2 + $0xc8] sm:$0xff] }
  0xb5   : > { %1027 = vmatpush.msrb.mxu1 %v2572_v45 }
  0xb6   : > { %451 = vrot.lane.b32.xlu1 %v3165_v56, %s2911_s26  ;;  %529 = vrot.lane.b32.xlu2 %v467_v57, %s4270_s16  ;;  %s2493_s16 = sshll.u32 %s339_s29, 6  ;;  %s2383_s26 = scalar_lea.hbm %s4267_s8, %s2780_s21 }
  0xb7   : > { %763 = vmatpush.msra.mxu0 %v2530_v6  ;;  %v709_v6 = vld [vmem:[#allocation2 + $0x2] sm:$0xff]  ;;  %s4013_s27 = scalar_lea.vmem [#allocation4], %s2493_s16  ;;  %s2386_s0 = sshll.u32 %s2383_s26, 4  ;;  %s2387_s0 = int_to_ptr.hbm [resolvable:$true] %s2386_s0 }
  0xb8   : > { %s2861_s24 = sshra.s32 %s2387_s0, 4  ;;  %s2862_s24 = int_to_ptr.hbm [resolvable:$true] %s2861_s24 }
  0xb9   : > { %s2863_s1 = scalar_lea.hbm %s2862_s24, 64  ;;  %p2868_p0 = scmp.lt.s32.totalorder %s2862_s24, %s4267_s8 }
  0xba   : > { %p2864_p11 = scmp.ne.s32.totalorder %s2862_s24, %s2863_s1  ;;  %p2869_p1 = scmp.lt.s32.totalorder %s2867_s13, %s2863_s1 }
  0xbc   : > { %p2865_p12 = pnand %p2864_p11, %p3005_p5  ;;  %p2870_p2 = por %p2869_p1, %p2868_p0 }
  0xbe   : > { %p2866_p13 = pneg %p2865_p12 }
  0xc0   : > { %p2871_p3 = pnand %p2870_p2, %p2866_p13 }
  0xf4   : > { %v520_v9 = vpop.permute.xlu2 %519 }
  0xf5   : > { %543 = vst.msk [vmem:[#allocation2 + $0x21] sm:$0xff] %vm541_vm3, %v520_v9  ;;  %v2605_v9 = vld [vmem:[%s4278_s2 + $0x178] sm:$0xff] }
  0xfc   : > { %v524_v12 = vpop.permute.xlu2 %523  ;;  %v3226_v13 = vld [vmem:[#allocation2 + $0x21] sm:$0xff] }
  0xfd   : > { %v3228_v14 = vld [vmem:[#allocation2 + $0x20] sm:$0xff]  ;;  %545 = vst.msk [vmem:[#allocation2 + $0x41] sm:$0xff] %vm541_vm3, %v524_v12  ;;  %2516 = vmatmul.msk.f32.vlgmr.msra.gmra.mxu3 %vm469_vm0, %v3226_v13  ;;  %v2604_v12 = vld [vmem:[%s4278_s2 + $0x170] sm:$0xff] }
  0xfe   : > { %v3230_v15 = vld [vmem:[#allocation2 + $0x22] sm:$0xff]  ;;  %2524 = vmatmul.msk.f32.vlgmr.msra.gmra.mxu1 %vm469_vm0, %v3228_v14  ;;  %1199 = vmatpush.msra.mxu3 %v2605_v9 }
  0xff   : > { %2538 = vmatmul.msk.f32.vlgmr.msra.gmra.mxu2 %vm469_vm0, %v3230_v15  ;;  %v1385_v9 = vld [vmem:[%s4263_s4] sm:$0xff] }
 0x100   : > { %1200 = vmatpush.msra.mxu3 %v2604_v12  ;;  %v2648_v12 = vld [vmem:[%s4263_s4 + $0x40] sm:$0xff] }
 0x102   : > { %1201 = vmatpush.msra.mxu3 %v2603_v17 }
 0x104   : > { %v3305_v41 = vld [vmem:[#allocation2 + $0x41] sm:$0xff]  ;;  %1202 = vmatpush.msra.mxu3 %v2602_v18 }
 0x105   : > { %v3320_v46 = vld [vmem:[#allocation2 + $0x40] sm:$0xff] }
 0x106   : > { %v3322_v47 = vld [vmem:[#allocation2 + $0x42] sm:$0xff] }
 0x107   : > { %v1532_v18 = vld [vmem:[#allocation3 + $0x2] sm:$0xff] }
 0x10c   : > { %v522_v20 = vpop.permute.xlu0 %521 }
 0x10d   : > { %544 = vst.msk [vmem:[#allocation2 + $0x31] sm:$0xff] %vm541_vm3, %v522_v20  ;;  %v2601_v20 = vld [vmem:[%s4278_s2 + $0x158] sm:$0xff] }
 0x10e   : > { %1203 = vmatpush.msra.mxu3 %v2601_v20  ;;  %v1389_v20 = vld [vmem:[#allocation3 + $0x1] sm:$0xff] }
 0x110   : > { %v530_v26 = vpop.permute.xlu2 %529  ;;  %1204 = vmatpush.msra.mxu3 %v2600_v23  ;;  %v2661_v23 = vld [vmem:[%s4263_s4 + $0x68] sm:$0xff] }
 0x111   : > { %548 = vst.msk [vmem:[#allocation2 + $0x71] sm:$0xff] %vm541_vm3, %v530_v26 }
 0x114   : > { %v518_v27 = vpop.permute.xlu1 %517  ;;  %v3265_v28 = vld [vmem:[#allocation2 + $0x31] sm:$0xff] }
 0x115   : > { %v3267_v30 = vld [vmem:[#allocation2 + $0x30] sm:$0xff]  ;;  %542 = vst.msk [vmem:[#allocation2 + $0x11] sm:$0xff] %vm541_vm3, %v518_v27  ;;  %2517 = vmatmul.msk.f32.gmra.mxu3 %vm469_vm0, %v3265_v28 }
 0x116   : > { %v3269_v31 = vld [vmem:[#allocation2 + $0x32] sm:$0xff]  ;;  %2525 = vmatmul.msk.f32.gmra.mxu1 %vm469_vm0, %v3267_v30 }
 0x117   : > { %2539 = vmatmul.msk.f32.gmra.mxu2 %vm469_vm0, %v3269_v31 }
 0x118   : > { %v3376_v5 = vld [vmem:[#allocation2 + $0x71] sm:$0xff] }
 0x119   : > { %v557_v7 = vld [vmem:[#allocation2 + $0x70] sm:$0xff] }
 0x11a   : > { %v3378_v8 = vld [vmem:[#allocation2 + $0x72] sm:$0xff] }
 0x11c   : > { %v526_v42 = vpop.permute.xlu0 %525  ;;  %v3307_v43 = vld [vmem:[#allocation2 + $0x11] sm:$0xff] }
 0x11d   : > { %546 = vst.msk [vmem:[#allocation2 + $0x51] sm:$0xff] %vm541_vm3, %v526_v42  ;;  %2515 = vmatmul.msk.f32.gmra.mxu0 %vm469_vm0, %v3307_v43  ;;  %2518 = vmatmul.msk.f32.gmra.mxu3 %vm469_vm0, %v3305_v41  ;;  %v551_v0 = vld [vmem:[#allocation2 + $0x10] sm:$0xff] }
 0x11e   : > { %2526 = vmatmul.msk.f32.gmra.mxu1 %vm469_vm0, %v3320_v46  ;;  %v710_v10 = vld [vmem:[#allocation2 + $0x12] sm:$0xff] }
 0x11f   : > { %2540 = vmatmul.msk.f32.gmra.mxu2 %vm469_vm0, %v3322_v47 }
 0x120   : > { %v528_v49 = vpop.permute.xlu1 %527 }
 0x121   : > { %547 = vst.msk [vmem:[#allocation2 + $0x61] sm:$0xff] %vm541_vm3, %v528_v49  ;;  %v2630_v49 = vld [vmem:[%s4263_s4 + $0x30] sm:$0xff] }
 0x124   : > { %v395_v53 = vpop.permute.xlu0 %394  ;;  %v3335_v54 = vld [vmem:[#allocation2 + $0x51] sm:$0xff] }
 0x125   : > { %v3337_v55 = vld [vmem:[#allocation2 + $0x50] sm:$0xff]  ;;  %v411_v58 = vmax.f32 %v3158_v51, %v395_v53  ;;  %2519 = vmatmul.msk.f32.gmra.mxu3 %vm469_vm0, %v3335_v54  ;;  %2522 = vmatmul.msk.f32.vlgmr.msrb.gmra.mxu0 %vm469_vm0, %v550_v50  ;;  %v2561_v51 = vld [vmem:[%s4278_s2 + $0xd8] sm:$0xff]  ;;  %v2629_v50 = vld [vmem:[%s4263_s4 + $0x28] sm:$0xff] }
 0x126   : > { %v3339_v57 = vld [vmem:[#allocation2 + $0x52] sm:$0xff]  ;;  %2527 = vmatmul.msk.f32.gmra.mxu1 %vm469_vm0, %v3337_v55  ;;  %934 = vmatpush.msrb.mxu0 %v2563_v52 }
 0x127   : > { %2541 = vmatmul.msk.f32.gmra.mxu2 %vm469_vm0, %v3339_v57  ;;  %v428_v60 = vmax.f32 %v411_v58, %v3165_v56 }
 0x128   : > { %v452_v61 = vpop.permute.xlu1 %451  ;;  %935 = vmatpush.msrb.mxu0 %v2562_v59  ;;  %v3357_v63 = vld [vmem:[#allocation2 + $0x61] sm:$0xff]  ;;  %v3478_v32 = vpop.f32.mrf.mxu0 }
 0x129   : > { %v468_v62 = vmax.f32 %v428_v60, %v452_v61  ;;  %v556_v56 = vld [vmem:[#allocation2 + $0x60] sm:$0xff] }
 0x12a   : > { %936 = vmatpush.msrb.mxu0 %v2561_v51  ;;  %v3365_v2 = vld [vmem:[#allocation2 + $0x62] sm:$0xff] }
 0x12b   : > { %531 = vrot.lane.b32.xlu2 %v468_v62, %s4280_s17  ;;  %s2384_s17 = sshll.u32 %s4013_s27, 4  ;;  %s2385_s17 = int_to_ptr.vmem [resolvable:$true] %s2384_s17 }
 0x12c   : > { %937 = vmatpush.msrb.mxu0 %v2560_v1  ;;  %v2628_v1 = vld [vmem:[%s4263_s4 + $0x20] sm:$0xff] }
 0x12d   : > { %2520 = vmatmul.msk.f32.gmra.mxu3 %vm469_vm0, %v3357_v63  ;;  %2523 = vmatmul.msk.f32.gmra.mxu0 %vm469_vm0, %v551_v0 }
 0x12e   : > { %2528 = vmatmul.msk.f32.gmra.mxu1 %vm469_vm0, %v556_v56  ;;  %938 = vmatpush.msrb.mxu0 %v2559_v3 }
 0x12f   : > { %2542 = vmatmul.msk.f32.gmra.mxu2 %vm469_vm0, %v3365_v2 }
 0x130   : > { %939 = vmatpush.msrb.mxu0 %v2558_v4 }
 0x135   : > { %2521 = vmatmul.msk.f32.gmra.mxu3 %vm469_vm0, %v3376_v5  ;;  %2536 = vmatmul.msk.f32.vlgmr.msra.gmra.mxu0 %vm469_vm0, %v709_v6 }
 0x136   : > { %2529 = vmatmul.msk.f32.gmra.mxu1 %vm469_vm0, %v557_v7  ;;  %1287 = vmatpush.msra.mxu0 %v2619_v11  ;;  %v1377_v11 = vld [vmem:[#allocation3] sm:$0xff] }
 0x137   : > { %2543 = vmatmul.msk.f32.gmra.mxu2 %vm469_vm0, %v3378_v8 }
 0x138   : > { %1288 = vmatpush.msra.mxu0 %v2618_v16 }
 0x13d   : > { %2537 = vmatmul.msk.f32.gmra.mxu0 %vm469_vm0, %v710_v10  ;;  %2550 = vmatmul.msk.f32.vlgmr.msrb.gmra.mxu3 %vm469_vm0, %v551_v0 }
 0x13e   : > { %2578 = vmatmul.msk.f32.vlgmr.msrb.gmra.mxu1 %vm469_vm0, %v710_v10  ;;  %v2649_v10 = vld [vmem:[%s4263_s4 + $0x48] sm:$0xff] }
 0x13f   : > { %2592 = vmatmul.msk.f32.vlgmr.msrb.gmra.mxu2 %vm469_vm0, %v3228_v14 }
 0x145   : > { %2551 = vmatmul.msk.f32.gmra.mxu3 %vm469_vm0, %v3228_v14  ;;  %2564 = vmatmul.msk.f32.vlgmr.msrb.gmra.mxu0 %vm469_vm0, %v3307_v43  ;;  %v2617_v14 = vld [vmem:[%s4278_s2 + $0x198] sm:$0xff] }
 0x146   : > { %2579 = vmatmul.msk.f32.gmra.mxu1 %vm469_vm0, %v3230_v15  ;;  %1289 = vmatpush.msra.mxu0 %v2617_v14  ;;  %v1157_v43 = vld [vmem:[#allocation2 + $0x91] sm:$0xff] }
 0x147   : > { %2593 = vmatmul.msk.f32.gmra.mxu2 %vm469_vm0, %v3267_v30 }
 0x148   : > { %1290 = vmatpush.msra.mxu0 %v2616_v19  ;;  %v2663_v19 = vld [vmem:[%s4263_s4 + $0x78] sm:$0xff] }
 0x14a   : > { %1291 = vmatpush.msra.mxu0 %v2615_v22  ;;  %v2662_v22 = vld [vmem:[%s4263_s4 + $0x70] sm:$0xff] }
 0x14c   : > { %1292 = vmatpush.msra.mxu0 %v2614_v24 }
 0x14d   : > { %2552 = vmatmul.msk.f32.gmra.mxu3 %vm469_vm0, %v3267_v30  ;;  %2565 = vmatmul.msk.f32.gmra.mxu0 %vm469_vm0, %v3226_v13 }
 0x14e   : > { %2580 = vmatmul.msk.f32.gmra.mxu1 %vm469_vm0, %v3269_v31  ;;  %1667 = vmatpush.msrb.mxu0 %v2663_v19 }
 0x14f   : > { %2594 = vmatmul.msk.f32.gmra.mxu2 %vm469_vm0, %v3320_v46 }
 0x150   : > { %1668 = vmatpush.msrb.mxu0 %v2662_v22 }
 0x152   : > { %1669 = vmatpush.msrb.mxu0 %v2661_v23 }
 0x155   : > { %2553 = vmatmul.msk.f32.gmra.mxu3 %vm469_vm0, %v3320_v46  ;;  %2566 = vmatmul.msk.f32.gmra.mxu0 %vm469_vm0, %v3265_v28 }
 0x156   : > { %2581 = vmatmul.msk.f32.gmra.mxu1 %vm469_vm0, %v3322_v47 }
 0x157   : > { %2595 = vmatmul.msk.f32.gmra.mxu2 %vm469_vm0, %v3337_v55 }
 0x15d   : > { %2554 = vmatmul.msk.f32.gmra.mxu3 %vm469_vm0, %v3337_v55  ;;  %2567 = vmatmul.msk.f32.gmra.mxu0 %vm469_vm0, %v3305_v41 }
 0x15e   : > { %2582 = vmatmul.msk.f32.gmra.mxu1 %vm469_vm0, %v3339_v57 }
 0x15f   : > { %2596 = vmatmul.msk.f32.gmra.mxu2 %vm469_vm0, %v556_v56 }
 0x165   : > { %2555 = vmatmul.msk.f32.gmra.mxu3 %vm469_vm0, %v556_v56  ;;  %2568 = vmatmul.msk.f32.gmra.mxu0 %vm469_vm0, %v3335_v54  ;;  %v1388_v56 = vld [vmem:[%s4263_s4 + $0x18] sm:$0xff] }
 0x166   : > { %2583 = vmatmul.msk.f32.gmra.mxu1 %vm469_vm0, %v3365_v2  ;;  %1503 = vmatpush.msra.mxu2 %v1388_v56 }
 0x167   : > { %2597 = vmatmul.msk.f32.gmra.mxu2 %vm469_vm0, %v557_v7 }
 0x16d   : > { %2556 = vmatmul.msk.f32.gmra.mxu3 %vm469_vm0, %v557_v7  ;;  %2569 = vmatmul.msk.f32.gmra.mxu0 %vm469_vm0, %v3357_v63  ;;  %v1386_v7 = vld [vmem:[%s4263_s4 + $0x8] sm:$0xff] }
 0x16e   : > { %2584 = vmatmul.msk.f32.gmra.mxu1 %vm469_vm0, %v3378_v8 }
 0x175   : > { %2570 = vmatmul.msk.f32.gmra.mxu0 %vm469_vm0, %v3376_v5 }
 0x17b   : > { %v3536_v46 = vpop.f32.mrf.mxu1 }
 0x180   : > { %v3480_v33 = vpop.f32.mrf.mxu3 }
 0x185   : > { %v532_v25 = vpop.permute.xlu2 %531 }
 0x186   : > { %549 = vst.msk [vmem:[#allocation2 + $0x81] sm:$0xff] %vm541_vm3, %v532_v25 }
 0x18d   : > { %v804_v26 = vld [vmem:[#allocation2 + $0x80] sm:$0xff] }
 0x18e   : > { %v892_v27 = vld [vmem:[#allocation2 + $0x81] sm:$0xff]  ;;  %2557 = vmatmul.msk.f32.gmra.mxu3 %vm469_vm0, %v804_v26  ;;  %2598 = vmatmul.msk.f32.gmra.mxu2 %vm469_vm0, %v804_v26 }
 0x18f   : > { %v980_v30 = vld [vmem:[#allocation2 + $0x82] sm:$0xff]  ;;  %2571 = vmatmul.msk.f32.gmra.mxu0 %vm469_vm0, %v892_v27 }
 0x190   : > { %2585 = vmatmul.msk.f32.gmra.mxu1 %vm469_vm0, %v980_v30 }
 0x193   : > { %v3550_v52 = vpop.f32.mrf.mxu1 }
 0x196   : > { %2606 = vmatmul.msk.f32.vlgmr.msra.gmra.mxu3 %vm469_vm0, %v3226_v13  ;;  %2599 = vmatmul.msk.f32.gmra.mxu2 %vm469_vm0, %v1069_v34 }
 0x197   : > { %2620 = vmatmul.msk.f32.vlgmr.msra.gmra.mxu0 %vm469_vm0, %v3230_v15 }
 0x198   : > { %v3489_v36 = vpop.f32.mrf.mxu3 }
 0x19a   : > { %v3487_v35 = vpop.f32.mrf.mxu0 }
 0x19e   : > { %2607 = vmatmul.msk.f32.gmra.mxu3 %vm469_vm0, %v3265_v28 }
 0x19f   : > { %2621 = vmatmul.msk.f32.gmra.mxu0 %vm469_vm0, %v3269_v31 }
 0x1a0   : > { %v3497_v38 = vpop.f32.mrf.mxu3 }
 0x1a2   : > { %v3495_v37 = vpop.f32.mrf.mxu0 }
 0x1a3   : > { %v686_v24 = vadd.f32 %v3495_v37, %v3478_v32 }
 0x1a6   : > { %2608 = vmatmul.msk.f32.gmra.mxu3 %vm469_vm0, %v3305_v41  ;;  %v2631_v41 = vld [vmem:[%s4263_s4 + $0x38] sm:$0xff] }
 0x1a7   : > { %2622 = vmatmul.msk.f32.gmra.mxu0 %vm469_vm0, %v3322_v47  ;;  %1438 = vmatpush.msra.mxu1 %v2631_v41  ;;  %v3540_v47 = vpop.f32.mrf.mxu2  ;;  %v2675_v41 = vld [vmem:[%s4263_s4 + $0x98] sm:$0xff] }
 0x1a8   : > { %v3509_v15 = vpop.f32.mrf.mxu3 }
 0x1a9   : > { %1439 = vmatpush.msra.mxu1 %v2630_v49 }
 0x1aa   : > { %v3503_v13 = vpop.f32.mrf.mxu0 }
 0x1ab   : > { %1440 = vmatpush.msra.mxu1 %v2629_v50  ;;  %v689_v37 = vadd.f32 %v3503_v13, %v3487_v35 }
 0x1ad   : > { %1441 = vmatpush.msra.mxu1 %v2628_v1 }
 0x1ae   : > { %2609 = vmatmul.msk.f32.gmra.mxu3 %vm469_vm0, %v3335_v54  ;;  %2632 = vmatmul.msk.f32.vlgmr.msra.gmra.mxu1 %vm1346_vm4, %v1389_v20 }
 0x1af   : > { %2623 = vmatmul.msk.f32.gmra.mxu0 %vm469_vm0, %v3339_v57  ;;  %v3552_v53 = vpop.f32.mrf.mxu2  ;;  %v3558_v57 = vpop.f32.mrf.mxu1  ;;  %1753 = vmatpush.msrb.mxu1 %v2675_v41 }
 0x1b0   : > { %v3517_v31 = vpop.f32.mrf.mxu3 }
 0x1b2   : > { %v3511_v28 = vpop.f32.mrf.mxu0 }
 0x1b3   : > { %v789_v34 = vadd.f32 %v3511_v28, %v686_v24 }
 0x1b6   : > { %2610 = vmatmul.msk.f32.gmra.mxu3 %vm469_vm0, %v3357_v63 }
 0x1b7   : > { %2624 = vmatmul.msk.f32.gmra.mxu0 %vm469_vm0, %v3365_v2  ;;  %v3560_v58 = vpop.f32.mrf.mxu2  ;;  %v3566_v61 = vpop.f32.mrf.mxu1  ;;  %v1387_v2 = vld [vmem:[%s4263_s4 + $0x10] sm:$0xff] }
 0x1b8   : > { %v3525_v40 = vpop.f32.mrf.mxu3  ;;  %1504 = vmatpush.msra.mxu2 %v1387_v2 }
 0x1ba   : > { %v3519_v39 = vpop.f32.mrf.mxu0  ;;  %1505 = vmatpush.msra.mxu2 %v1386_v7 }
 0x1bb   : > { %v790_v49 = vadd.f32 %v3519_v39, %v689_v37  ;;  %v3697_v39 = vld [vmem:[%s4281_s3] ss:$0 sm:$0xff] }
 0x1bc   : > { %1506 = vmatpush.msra.mxu2 %v1385_v9 }
 0x1bd   : > { %2640 = vmatmul.msk.f32.vlgmr.msra.gmra.mxu2 %vm1346_vm4, %v1377_v11 }
 0x1be   : > { %2611 = vmatmul.msk.f32.gmra.mxu3 %vm469_vm0, %v3376_v5  ;;  %v2651_v5 = vld [vmem:[%s4263_s4 + $0x58] sm:$0xff] }
 0x1bf   : > { %2625 = vmatmul.msk.f32.gmra.mxu0 %vm469_vm0, %v3378_v8  ;;  %v3568_v51 = vpop.f32.mrf.mxu2  ;;  %v3574_v0 = vpop.f32.mrf.mxu1  ;;  %1581 = vmatpush.msrb.mxu3 %v2651_v5  ;;  %v2650_v8 = vld [vmem:[%s4263_s4 + $0x50] sm:$0xff]  ;;  %v692_v5 = vadd.f32 %v3536_v46, %v3480_v33 }
 0x1c0   : > { %v3534_v45 = vpop.f32.mrf.mxu3 }
 0x1c1   : > { %1582 = vmatpush.msrb.mxu3 %v2650_v8  ;;  %v877_v29 = vadd.f32 %v3534_v45, %v789_v34  ;;  %v791_v35 = vadd.f32 %v3540_v47, %v692_v5  ;;  %v695_v47 = vadd.f32 %v3550_v52, %v3489_v36  ;;  %v698_v36 = vadd.f32 %v3558_v57, %v3497_v38  ;;  %v2673_v38 = vld [vmem:[%s4263_s4 + $0x88] sm:$0xff] }
 0x1c2   : > { %v3532_v42 = vpop.f32.mrf.mxu0 }
 0x1c3   : > { %1583 = vmatpush.msrb.mxu3 %v2649_v10  ;;  %v792_v22 = vadd.f32 %v3552_v53, %v695_v47 }
 0x1c5   : > { %1584 = vmatpush.msrb.mxu3 %v2648_v12 }
 0x1c6   : > { %2612 = vmatmul.msk.f32.gmra.mxu3 %vm469_vm0, %v892_v27 }
 0x1c7   : > { %2626 = vmatmul.msk.f32.gmra.mxu0 %vm469_vm0, %v980_v30  ;;  %v3585_v3 = vpop.f32.mrf.mxu2  ;;  %v3627_v16 = vpop.f32.mrf.mxu1  ;;  %v2660_v30 = vld [vmem:[%s4263_s4 + $0x60] sm:$0xff] }
 0x1c8   : > { %v3554_v54 = vpop.f32.mrf.mxu3  ;;  %1670 = vmatpush.msrb.mxu0 %v2660_v30 }
 0x1c9   : > { %v878_v2 = vadd.f32 %v3554_v54, %v790_v49 }
 0x1ca   : > { %v3542_v48 = vpop.f32.mrf.mxu0 }
 0x1cb   : > { %v966_v45 = vadd.f32 %v3542_v48, %v878_v2 }
 0x1ce   : > { %2613 = vmatmul.msk.f32.gmra.mxu3 %vm469_vm0, %v1157_v43  ;;  %v965_v43 = vadd.f32 %v3532_v42, %v877_v29  ;;  %v2674_v42 = vld [vmem:[%s4263_s4 + $0x90] sm:$0xff] }
 0x1cf   : > { %2627 = vmatmul.msk.f32.gmra.mxu0 %vm469_vm0, %v1245_v44  ;;  %v3632_v17 = vpop.f32.mrf.mxu2  ;;  %v1029_v25 = vpop.f32.mrf.mxu1  ;;  %1754 = vmatpush.msrb.mxu1 %v2674_v42 }
 0x1d0   : > { %v3562_v59 = vpop.f32.mrf.mxu3  ;;  %v1053_v56 = vadd.f32 %v1029_v25, %v965_v43 }
 0x1d1   : > { %v879_v46 = vadd.f32 %v3562_v59, %v791_v35  ;;  %1755 = vmatpush.msrb.mxu1 %v2673_v38 }
 0x1d2   : > { %v3556_v55 = vpop.f32.mrf.mxu0 }
 0x1d3   : > { %v967_v12 = vadd.f32 %v3556_v55, %v879_v46 }
 0x1d6   : > { %2652 = vmatmul.msk.f32.vlgmr.msrb.gmra.mxu3 %vm1346_vm4, %v1532_v18 }
 0x1d7   : > { %v1118_v26 = vpop.f32.mrf.mxu2  ;;  %v1032_v28 = vpop.f32.mrf.mxu1 }
 0x1d8   : > { %v3570_v62 = vpop.f32.mrf.mxu3  ;;  %v1142_v7 = vadd.f32 %v1118_v26, %v1053_v56  ;;  %v1054_v9 = vadd.f32 %v1032_v28, %v966_v45 }
 0x1d9   : > { %v880_v59 = vadd.f32 %v3570_v62, %v792_v22  ;;  %v793_v62 = vadd.f32 %v3560_v58, %v698_v36  ;;  %v2711_v36 = vld [vmem:[%s4263_s4 + $0xf8] sm:$0xff] }
 0x1da   : > { %v3564_v60 = vpop.f32.mrf.mxu0  ;;  %2012 = vmatpush.msra.mxu0 %v2711_v36 }
 0x1db   : > { %v968_v34 = vadd.f32 %v3564_v60, %v880_v59 }
 0x1df   : > { %v1121_v50 = vpop.f32.mrf.mxu2  ;;  %v1035_v33 = vpop.f32.mrf.mxu1 }
 0x1e0   : > { %v3587_v4 = vpop.f32.mrf.mxu3  ;;  %v1143_v19 = vadd.f32 %v1121_v50, %v1054_v9  ;;  %v1055_v25 = vadd.f32 %v1035_v33, %v967_v12 }
 0x1e1   : > { %v881_v58 = vadd.f32 %v3587_v4, %v793_v62 }
 0x1e2   : > { %v3572_v63 = vpop.f32.mrf.mxu0 }
 0x1e3   : > { %v969_v5 = vadd.f32 %v3572_v63, %v881_v58  ;;  %v2710_v58 = vld [vmem:[%s4263_s4 + $0xf0] sm:$0xff] }
 0x1e4   : > { %2013 = vmatpush.msra.mxu0 %v2710_v58  ;;  %v2056_v58 = vld [vmem:[#allocation3 + $0x92] sm:$0xff] }
 0x1e7   : > { %v1124_v10 = vpop.f32.mrf.mxu2  ;;  %v1038_v52 = vpop.f32.mrf.mxu1 }
 0x1e8   : > { %v3634_v14 = vpop.f32.mrf.mxu3  ;;  %v1144_v29 = vadd.f32 %v1124_v10, %v1055_v25  ;;  %v1056_v60 = vadd.f32 %v1038_v52, %v968_v34  ;;  %v2685_v52 = vld [vmem:[%s4263_s4 + $0xa8] sm:$0xff] }
 0x1ea   : > { %v3600_v6 = vpop.f32.mrf.mxu0 }
 0x1ef   : > { %v1127_v55 = vpop.f32.mrf.mxu2  ;;  %v1041_v2 = vpop.f32.mrf.mxu1 }
 0x1f0   : > { %v3671_v27 = vpop.f32.mrf.mxu3 }
 0x1f2   : > { %v3648_v21 = vpop.f32.mrf.mxu0 }
 0x20c   : > { %v3680_v32 = vpop.f32.mrf.mxu0 }
 0x211   : > { %v3686_v44 = vpop.f32.mrf.mxu3 }
 0x214   : > { %v1294_v1 = vpop.f32.mrf.mxu0 }
 0x219   : > { %v1206_v8 = vpop.f32.mrf.mxu3 }
 0x21a   : > { %v1230_v13 = vadd.f32 %v1206_v8, %v1142_v7  ;;  %v1145_v7 = vadd.f32 %v1127_v55, %v1056_v60  ;;  %v1130_v8 = vpop.f32.mrf.mxu2 }
 0x21c   : > { %v1297_v54 = vpop.f32.mrf.mxu0  ;;  %v1318_v48 = vadd.f32 %v1294_v1, %v1230_v13  ;;  %v701_v1 = vadd.f32 %v3566_v61, %v3509_v15  ;;  %v2672_v61 = vld [vmem:[%s4263_s4 + $0x80] sm:$0xff] }
 0x21d   : > { %1756 = vmatpush.msrb.mxu1 %v2672_v61 }
 0x21e   : > { %v1330_v11 = vadd.f32 %v3697_v39, %v1318_v48  ;;  %v794_v4 = vadd.f32 %v3568_v51, %v701_v1  ;;  %v1057_v51 = vadd.f32 %v1041_v2, %v969_v5  ;;  %v704_v48 = vadd.f32 %v3574_v0, %v3517_v31  ;;  %v2687_v31 = vld [vmem:[%s4263_s4 + $0xb8] sm:$0xff] }
 0x21f   : > { %v2699_v0 = vld [vmem:[%s4263_s4 + $0xd8] sm:$0xff]  ;;  %1839 = vmatpush.msrb.mxu2 %v2687_v31 }
 0x220   : > { %v1338_v18 = vmax.f32 %v1330_v11, 0.0  ;;  %v882_v63 = vadd.f32 %v3634_v14, %v794_v4  ;;  %v1146_v11 = vadd.f32 %v1130_v8, %v1057_v51  ;;  %v795_v25 = vadd.f32 %v3585_v3, %v704_v48  ;;  %1926 = vmatpush.msra.mxu3 %v2699_v0  ;;  %v2708_v8 = vld [vmem:[%s4263_s4 + $0xe0] sm:$0xff] }
 0x221   : > { %v1209_v20 = vpop.f32.mrf.mxu3 }
 0x222   : > { %1369 = vst.msk [vmem:[#allocation3 + $0x11] sm:$0xff] %vm1346_vm4, %v1338_v18  ;;  %v1231_v23 = vadd.f32 %v1209_v20, %v1143_v19  ;;  %v970_v10 = vadd.f32 %v3600_v6, %v882_v63  ;;  %v1044_v6 = vpop.f32.mrf.mxu1  ;;  %v1133_v22 = vpop.f32.mrf.mxu2  ;;  %v883_v55 = vadd.f32 %v3671_v27, %v795_v25  ;;  %v2696_v27 = vld [vmem:[%s4263_s4 + $0xc0] sm:$0xff] }
 0x224   : > { %v1300_v24 = vpop.f32.mrf.mxu0  ;;  %v1319_v26 = vadd.f32 %v1297_v54, %v1231_v23  ;;  %v2686_v23 = vld [vmem:[%s4263_s4 + $0xb0] sm:$0xff]  ;;  %v1058_v59 = vadd.f32 %v1044_v6, %v970_v10 }
 0x225   : > { %1840 = vmatpush.msrb.mxu2 %v2686_v23  ;;  %v2722_v23 = vld [vmem:[%s4263_s4 + $0x110] sm:$0xff] }
 0x226   : > { %v1331_v30 = vadd.f32 %v3697_v39, %v1319_v26 }
 0x227   : > { %1841 = vmatpush.msrb.mxu2 %v2685_v52 }
 0x228   : > { %v1339_v41 = vmax.f32 %v1331_v30, 0.0  ;;  %v2697_v30 = vld [vmem:[%s4263_s4 + $0xc8] sm:$0xff] }
 0x229   : > { %v1212_v53 = vpop.f32.mrf.mxu3  ;;  %v3714_v37 = vld [vmem:[#allocation3 + $0x11] sm:$0xff] }
 0x22a   : > { %v1378_v43 = vld [vmem:[#allocation3 + $0x10] sm:$0xff]  ;;  %1370 = vst.msk [vmem:[#allocation3 + $0x21] sm:$0xff] %vm1346_vm4, %v1339_v41  ;;  %v1232_v28 = vadd.f32 %v1212_v53, %v1144_v29  ;;  %2633 = vmatmul.msk.f32.gmra.mxu1 %vm1346_vm4, %v3714_v37  ;;  %v707_v41 = vadd.f32 %v3627_v16, %v3525_v40  ;;  %v1147_v53 = vadd.f32 %v1133_v22, %v1058_v59  ;;  %v1136_v60 = vpop.f32.mrf.mxu2  ;;  %v1047_v2 = vpop.f32.mrf.mxu1 }
 0x22b   : > { %v3716_v49 = vld [vmem:[#allocation3 + $0x12] sm:$0xff]  ;;  %2641 = vmatmul.msk.f32.gmra.mxu2 %vm1346_vm4, %v1378_v43  ;;  %2664 = vmatmul.msk.f32.vlgmr.msrb.gmra.mxu0 %vm1346_vm4, %v1378_v43  ;;  %v2684_v43 = vld [vmem:[%s4263_s4 + $0xa0] sm:$0xff]  ;;  %v971_v40 = vadd.f32 %v3648_v21, %v883_v55 }
 0x22c   : > { %2653 = vmatmul.msk.f32.gmra.mxu3 %vm1346_vm4, %v3716_v49  ;;  %v1303_v57 = vpop.f32.mrf.mxu0  ;;  %v1320_v50 = vadd.f32 %v1300_v24, %v1232_v28  ;;  %v2698_v24 = vld [vmem:[%s4263_s4 + $0xd0] sm:$0xff]  ;;  %v2723_v21 = vld [vmem:[%s4263_s4 + $0x118] sm:$0xff]  ;;  %1842 = vmatpush.msrb.mxu2 %v2684_v43 }
 0x22d   : > { %1927 = vmatpush.msra.mxu3 %v2698_v24  ;;  %2098 = vmatpush.msra.mxu1 %v2723_v21 }
 0x22e   : > { %v1332_v56 = vadd.f32 %v3697_v39, %v1320_v50  ;;  %v796_v50 = vadd.f32 %v3632_v17, %v707_v41 }
 0x22f   : > { %1928 = vmatpush.msra.mxu3 %v2697_v30  ;;  %2099 = vmatpush.msra.mxu1 %v2722_v23 }
 0x230   : > { %v1340_v45 = vmax.f32 %v1332_v56, 0.0  ;;  %v2709_v56 = vld [vmem:[%s4263_s4 + $0xe8] sm:$0xff]  ;;  %v884_v5 = vadd.f32 %v3686_v44, %v796_v50  ;;  %v2165_v50 = vld [vmem:[%s4265_s6 + $0x10] sm:$0xff] }
 0x231   : > { %v1215_v35 = vpop.f32.mrf.mxu3  ;;  %v3734_v13 = vld [vmem:[#allocation3 + $0x21] sm:$0xff]  ;;  %1929 = vmatpush.msra.mxu3 %v2696_v27  ;;  %2014 = vmatpush.msra.mxu0 %v2709_v56 }
 0x232   : > { %v3736_v42 = vld [vmem:[#allocation3 + $0x20] sm:$0xff]  ;;  %1371 = vst.msk [vmem:[#allocation3 + $0x31] sm:$0xff] %vm1346_vm4, %v1340_v45  ;;  %v1233_v15 = vadd.f32 %v1215_v35, %v1145_v7  ;;  %2634 = vmatmul.msk.f32.gmra.mxu1 %vm1346_vm4, %v3734_v13  ;;  %v1059_v45 = vadd.f32 %v1047_v2, %v971_v40  ;;  %v972_v44 = vadd.f32 %v3680_v32, %v884_v5  ;;  %v1139_v48 = vpop.f32.mrf.mxu2 }
 0x233   : > { %v3738_v54 = vld [vmem:[#allocation3 + $0x22] sm:$0xff]  ;;  %2642 = vmatmul.msk.f32.gmra.mxu2 %vm1346_vm4, %v3736_v42  ;;  %2665 = vmatmul.msk.f32.gmra.mxu0 %vm1346_vm4, %v3736_v42 }
 0x234   : > { %2654 = vmatmul.msk.f32.gmra.mxu3 %vm1346_vm4, %v3738_v54  ;;  %v1321_v9 = vadd.f32 %v1303_v57, %v1233_v15  ;;  %v1306_v33 = vpop.f32.mrf.mxu0  ;;  %v1148_v17 = vadd.f32 %v1136_v60, %v1059_v45  ;;  %2015 = vmatpush.msra.mxu0 %v2708_v8 }
 0x236   : > { %v1333_v46 = vadd.f32 %v3697_v39, %v1321_v9 }
 0x238   : > { %v1341_v47 = vmax.f32 %v1333_v46, 0.0  ;;  %v1050_v46 = vpop.f32.mrf.mxu1 }
 0x239   : > { %v1218_v12 = vpop.f32.mrf.mxu3  ;;  %v3758_v18 = vld [vmem:[#allocation3 + $0x31] sm:$0xff]  ;;  %v1060_v10 = vadd.f32 %v1050_v46, %v972_v44 }
 0x23a   : > { %v3760_v19 = vld [vmem:[#allocation3 + $0x30] sm:$0xff]  ;;  %1372 = vst.msk [vmem:[#allocation3 + $0x41] sm:$0xff] %vm1346_vm4, %v1341_v47  ;;  %v1234_v14 = vadd.f32 %v1218_v12, %v1146_v11  ;;  %2635 = vmatmul.msk.f32.gmra.mxu1 %vm1346_vm4, %v3758_v18 }
 0x23b   : > { %v3762_v20 = vld [vmem:[#allocation3 + $0x32] sm:$0xff]  ;;  %2643 = vmatmul.msk.f32.gmra.mxu2 %vm1346_vm4, %v3760_v19  ;;  %2666 = vmatmul.msk.f32.gmra.mxu0 %vm1346_vm4, %v3760_v19  ;;  %v1149_v32 = vadd.f32 %v1139_v48, %v1060_v10 }
 0x23c   : > { %2655 = vmatmul.msk.f32.gmra.mxu3 %vm1346_vm4, %v3762_v20  ;;  %v1322_v26 = vadd.f32 %v1306_v33, %v1234_v14  ;;  %v1309_v34 = vpop.f32.mrf.mxu0 }
 0x23e   : > { %v1334_v3 = vadd.f32 %v3697_v39, %v1322_v26 }
 0x240   : > { %v1342_v29 = vmax.f32 %v1334_v3, 0.0 }
 0x241   : > { %v1221_v62 = vpop.f32.mrf.mxu3  ;;  %v3805_v28 = vld [vmem:[#allocation3 + $0x41] sm:$0xff] }
 0x242   : > { %v3807_v38 = vld [vmem:[#allocation3 + $0x40] sm:$0xff]  ;;  %1373 = vst.msk [vmem:[#allocation3 + $0x51] sm:$0xff] %vm1346_vm4, %v1342_v29  ;;  %v1235_v16 = vadd.f32 %v1221_v62, %v1147_v53  ;;  %2636 = vmatmul.msk.f32.gmra.mxu1 %vm1346_vm4, %v3805_v28 }
 0x243   : > { %v3809_v57 = vld [vmem:[#allocation3 + $0x42] sm:$0xff]  ;;  %2644 = vmatmul.msk.f32.gmra.mxu2 %vm1346_vm4, %v3807_v38  ;;  %2667 = vmatmul.msk.f32.gmra.mxu0 %vm1346_vm4, %v3807_v38 }
 0x244   : > { %2656 = vmatmul.msk.f32.gmra.mxu3 %vm1346_vm4, %v3809_v57  ;;  %v1323_v1 = vadd.f32 %v1309_v34, %v1235_v16  ;;  %v1312_v4 = vpop.f32.mrf.mxu0  ;;  %v1508_v34 = vpop.f32.mrf.mxu2 }
 0x246   : > { %v1335_v7 = vadd.f32 %v3697_v39, %v1323_v1 }
 0x248   : > { %v1343_v35 = vmax.f32 %v1335_v7, 0.0 }
 0x249   : > { %v1224_v15 = vpop.f32.mrf.mxu3  ;;  %v3836_v61 = vld [vmem:[#allocation3 + $0x51] sm:$0xff] }
 0x24a   : > { %v1382_v51 = vld [vmem:[#allocation3 + $0x50] sm:$0xff]  ;;  %1374 = vst.msk [vmem:[#allocation3 + $0x61] sm:$0xff] %vm1346_vm4, %v1343_v35  ;;  %v1236_v9 = vadd.f32 %v1224_v15, %v1148_v17  ;;  %2637 = vmatmul.msk.f32.gmra.mxu1 %vm1346_vm4, %v3836_v61  ;;  %v2164_v35 = vld [vmem:[%s4265_s6 + $0x8] sm:$0xff] }
 0x24b   : > { %v3838_v63 = vld [vmem:[#allocation3 + $0x52] sm:$0xff]  ;;  %2645 = vmatmul.msk.f32.gmra.mxu2 %vm1346_vm4, %v1382_v51  ;;  %2668 = vmatmul.msk.f32.gmra.mxu0 %vm1346_vm4, %v1382_v51 }
 0x24c   : > { %2657 = vmatmul.msk.f32.gmra.mxu3 %vm1346_vm4, %v3838_v63  ;;  %v1324_v33 = vadd.f32 %v1312_v4, %v1236_v9  ;;  %v1315_v6 = vpop.f32.mrf.mxu0  ;;  %v2163_v9 = vld [vmem:[%s4265_s6] sm:$0xff] }
 0x24e   : > { %v1336_v47 = vadd.f32 %v3697_v39, %v1324_v33 }
 0x250   : > { %v1344_v11 = vmax.f32 %v1336_v47, 0.0 }
 0x251   : > { %v1227_v12 = vpop.f32.mrf.mxu3  ;;  %v1395_v14 = vld [vmem:[#allocation3 + $0x61] sm:$0xff] }
 0x252   : > { %v1383_v31 = vld [vmem:[#allocation3 + $0x60] sm:$0xff]  ;;  %1375 = vst.msk [vmem:[#allocation3 + $0x71] sm:$0xff] %vm1346_vm4, %v1344_v11  ;;  %v1237_v22 = vadd.f32 %v1227_v12, %v1149_v32  ;;  %2638 = vmatmul.msk.f32.gmra.mxu1 %vm1346_vm4, %v1395_v14 }
 0x253   : > { %v3849_v0 = vld [vmem:[#allocation3 + $0x62] sm:$0xff]  ;;  %2646 = vmatmul.msk.f32.gmra.mxu2 %vm1346_vm4, %v1383_v31  ;;  %2669 = vmatmul.msk.f32.gmra.mxu0 %vm1346_vm4, %v1383_v31 }
 0x254   : > { %2658 = vmatmul.msk.f32.gmra.mxu3 %vm1346_vm4, %v3849_v0  ;;  %v1325_v24 = vadd.f32 %v1315_v6, %v1237_v22 }
 0x256   : > { %v1337_v25 = vadd.f32 %v3697_v39, %v1325_v24  ;;  %v2721_v39 = vld [vmem:[%s4263_s4 + $0x108] sm:$0xff] }
 0x257   : > { %2100 = vmatpush.msra.mxu1 %v2721_v39 }
 0x258   : > { %v1345_v59 = vmax.f32 %v1337_v25, 0.0 }
 0x259   : > { %v1396_v26 = vld [vmem:[#allocation3 + $0x71] sm:$0xff]  ;;  %v1586_v29 = vpop.f32.mrf.mxu3 }
 0x25a   : > { %v1384_v36 = vld [vmem:[#allocation3 + $0x70] sm:$0xff]  ;;  %1376 = vst.msk [vmem:[#allocation3 + $0x81] sm:$0xff] %vm1346_vm4, %v1345_v59  ;;  %2639 = vmatmul.msk.f32.gmra.mxu1 %vm1346_vm4, %v1396_v26 }
 0x25b   : > { %v3861_v52 = vld [vmem:[#allocation3 + $0x72] sm:$0xff]  ;;  %2647 = vmatmul.msk.f32.gmra.mxu2 %vm1346_vm4, %v1384_v36  ;;  %2670 = vmatmul.msk.f32.gmra.mxu0 %vm1346_vm4, %v1384_v36 }
 0x25c   : > { %2659 = vmatmul.msk.f32.gmra.mxu3 %vm1346_vm4, %v3861_v52 }
 0x261   : > { %v1625_v30 = vld [vmem:[#allocation3 + $0x80] sm:$0xff] }
 0x262   : > { %2676 = vmatmul.msk.f32.vlgmr.msrb.gmra.mxu1 %vm1346_vm4, %v3714_v37  ;;  %v2720_v37 = vld [vmem:[%s4263_s4 + $0x100] sm:$0xff] }
 0x263   : > { %2688 = vmatmul.msk.f32.vlgmr.msrb.gmra.mxu2 %vm1346_vm4, %v3716_v49  ;;  %2671 = vmatmul.msk.f32.gmra.mxu0 %vm1346_vm4, %v1625_v30  ;;  %v1884_v49 = vld [vmem:[#allocation3 + $0x90] sm:$0xff] }
 0x264   : > { %2700 = vmatmul.msk.f32.vlgmr.msra.gmra.mxu3 %vm1346_vm4, %v3736_v42  ;;  %2101 = vmatpush.msra.mxu1 %v2720_v37  ;;  %v1797_v42 = vld [vmem:[#allocation3 + $0x82] sm:$0xff] }
 0x26a   : > { %2677 = vmatmul.msk.f32.gmra.mxu1 %vm1346_vm4, %v3734_v13 }
 0x26b   : > { %2689 = vmatmul.msk.f32.gmra.mxu2 %vm1346_vm4, %v3738_v54  ;;  %2712 = vmatmul.msk.f32.vlgmr.msra.gmra.mxu0 %vm1346_vm4, %v3734_v13  ;;  %v1711_v13 = vld [vmem:[#allocation3 + $0x81] sm:$0xff] }
 0x26c   : > { %2701 = vmatmul.msk.f32.gmra.mxu3 %vm1346_vm4, %v3760_v19  ;;  %v1970_v19 = vld [vmem:[#allocation3 + $0x91] sm:$0xff] }
 0x272   : > { %2678 = vmatmul.msk.f32.gmra.mxu1 %vm1346_vm4, %v3758_v18 }
 0x273   : > { %2690 = vmatmul.msk.f32.gmra.mxu2 %vm1346_vm4, %v3762_v20  ;;  %2713 = vmatmul.msk.f32.gmra.mxu0 %vm1346_vm4, %v3758_v18  ;;  %v1443_v18 = vpop.f32.mrf.mxu1 }
 0x274   : > { %2702 = vmatmul.msk.f32.gmra.mxu3 %vm1346_vm4, %v3807_v38 }
 0x27a   : > { %2679 = vmatmul.msk.f32.gmra.mxu1 %vm1346_vm4, %v3805_v28 }
 0x27b   : > { %2691 = vmatmul.msk.f32.gmra.mxu2 %vm1346_vm4, %v3809_v57  ;;  %2714 = vmatmul.msk.f32.gmra.mxu0 %vm1346_vm4, %v3805_v28  ;;  %v2166_v28 = vld [vmem:[%s4265_s6 + $0x18] sm:$0xff] }
 0x27c   : > { %2703 = vmatmul.msk.f32.gmra.mxu3 %vm1346_vm4, %v1382_v51  ;;  %2207 = vmatpush.msra.mxu2 %v2166_v28 }
 0x27e   : > { %2208 = vmatpush.msra.mxu2 %v2165_v50 }
 0x280   : > { %2209 = vmatpush.msra.mxu2 %v2164_v35 }
 0x282   : > { %2680 = vmatmul.msk.f32.gmra.mxu1 %vm1346_vm4, %v3836_v61  ;;  %2210 = vmatpush.msra.mxu2 %v2163_v9 }
 0x283   : > { %2692 = vmatmul.msk.f32.gmra.mxu2 %vm1346_vm4, %v3838_v63  ;;  %2715 = vmatmul.msk.f32.gmra.mxu0 %vm1346_vm4, %v3836_v61 }
 0x284   : > { %2704 = vmatmul.msk.f32.gmra.mxu3 %vm1346_vm4, %v1383_v31 }
 0x28a   : > { %2681 = vmatmul.msk.f32.gmra.mxu1 %vm1346_vm4, %v1395_v14 }
 0x28b   : > { %2693 = vmatmul.msk.f32.gmra.mxu2 %vm1346_vm4, %v3849_v0  ;;  %2716 = vmatmul.msk.f32.gmra.mxu0 %vm1346_vm4, %v1395_v14  ;;  %v1509_v14 = vadd.f32 %v1508_v34, %v1443_v18 }
 0x28c   : > { %2705 = vmatmul.msk.f32.gmra.mxu3 %vm1346_vm4, %v1384_v36 }
 0x28d   : > { %v1610_v22 = vadd.f32 %v1586_v29, %v1509_v14 }
 0x292   : > { %2682 = vmatmul.msk.f32.gmra.mxu1 %vm1346_vm4, %v1396_v26 }
 0x293   : > { %2694 = vmatmul.msk.f32.gmra.mxu2 %vm1346_vm4, %v3861_v52  ;;  %2717 = vmatmul.msk.f32.gmra.mxu0 %vm1346_vm4, %v1396_v26 }
 0x294   : > { %2706 = vmatmul.msk.f32.gmra.mxu3 %vm1346_vm4, %v1625_v30 }
 0x29a   : > { %2683 = vmatmul.msk.f32.gmra.mxu1 %vm1346_vm4, %v1711_v13 }
 0x29b   : > { %2695 = vmatmul.msk.f32.gmra.mxu2 %vm1346_vm4, %v1797_v42  ;;  %2718 = vmatmul.msk.f32.gmra.mxu0 %vm1346_vm4, %v1711_v13 }
 0x29c   : > { %2707 = vmatmul.msk.f32.gmra.mxu3 %vm1346_vm4, %v1884_v49 }
 0x2a2   : > { %2724 = vmatmul.msk.f32.vlgmr.msra.gmra.mxu1 %vm1346_vm4, %v3738_v54 }
 0x2a3   : > { %2719 = vmatmul.msk.f32.gmra.mxu0 %vm1346_vm4, %v1970_v19 }
 0x2a7   : > { %v1446_v55 = vpop.f32.mrf.mxu1 }
 0x2a8   : > { %v1672_v53 = vpop.f32.mrf.mxu0 }
 0x2a9   : > { %v1696_v23 = vadd.f32 %v1672_v53, %v1610_v22 }
 0x2aa   : > { %2725 = vmatmul.msk.f32.gmra.mxu1 %vm1346_vm4, %v3762_v20 }
 0x2ae   : > { %v1511_v54 = vpop.f32.mrf.mxu2 }
 0x2af   : > { %v3931_v3 = vpop.f32.mrf.mxu1  ;;  %v1589_v20 = vpop.f32.mrf.mxu3  ;;  %v1512_v24 = vadd.f32 %v1511_v54, %v1446_v55  ;;  %v4006_v55 = vld [vmem:[%s4264_s5] ss:$0 sm:$0xff] }
 0x2b0   : > { %v1675_v62 = vpop.f32.mrf.mxu0 }
 0x2b1   : > { %v1611_v26 = vadd.f32 %v1589_v20, %v1512_v24 }
 0x2b2   : > { %2726 = vmatmul.msk.f32.gmra.mxu1 %vm1346_vm4, %v3809_v57 }
 0x2b3   : > { %v1697_v37 = vadd.f32 %v1675_v62, %v1611_v26 }
 0x2b6   : > { %v1514_v38 = vpop.f32.mrf.mxu2 }
 0x2b7   : > { %v3935_v41 = vpop.f32.mrf.mxu1  ;;  %v1592_v57 = vpop.f32.mrf.mxu3  ;;  %v1515_v49 = vadd.f32 %v1514_v38, %v3931_v3 }
 0x2b8   : > { %v1678_v16 = vpop.f32.mrf.mxu0 }
 0x2b9   : > { %v1612_v18 = vadd.f32 %v1592_v57, %v1515_v49 }
 0x2ba   : > { %2727 = vmatmul.msk.f32.gmra.mxu1 %vm1346_vm4, %v3838_v63 }
 0x2bb   : > { %v1698_v20 = vadd.f32 %v1678_v16, %v1612_v18 }
 0x2be   : > { %v1517_v60 = vpop.f32.mrf.mxu2 }
 0x2bf   : > { %v3939_v43 = vpop.f32.mrf.mxu1  ;;  %v3958_v1 = vpop.f32.mrf.mxu3  ;;  %v1518_v62 = vadd.f32 %v1517_v60, %v3935_v41 }
 0x2c0   : > { %v3961_v56 = vpop.f32.mrf.mxu0 }
 0x2c2   : > { %2728 = vmatmul.msk.f32.gmra.mxu1 %vm1346_vm4, %v3849_v0 }
 0x2c6   : > { %v3963_v2 = vpop.f32.mrf.mxu2 }
 0x2c7   : > { %v3943_v27 = vpop.f32.mrf.mxu1  ;;  %v3965_v45 = vpop.f32.mrf.mxu3 }
 0x2c8   : > { %v3967_v7 = vpop.f32.mrf.mxu0 }
 0x2ca   : > { %2729 = vmatmul.msk.f32.gmra.mxu1 %vm1346_vm4, %v3861_v52 }
 0x2ce   : > { %v3969_v8 = vpop.f32.mrf.mxu2 }
 0x2cf   : > { %v3950_v40 = vpop.f32.mrf.mxu1  ;;  %v3974_v4 = vpop.f32.mrf.mxu3 }
 0x2d0   : > { %v3976_v61 = vpop.f32.mrf.mxu0 }
 0x2d2   : > { %2730 = vmatmul.msk.f32.gmra.mxu1 %vm1346_vm4, %v1797_v42 }
 0x2d6   : > { %v3978_v51 = vpop.f32.mrf.mxu2 }
 0x2d7   : > { %v3953_v21 = vpop.f32.mrf.mxu1  ;;  %v3980_v63 = vpop.f32.mrf.mxu3 }
 0x2d8   : > { %v3985_v33 = vpop.f32.mrf.mxu0 }
 0x2da   : > { %2731 = vmatmul.msk.f32.gmra.mxu1 %vm1346_vm4, %v2056_v58 }
 0x2de   : > { %v3987_v46 = vpop.f32.mrf.mxu2 }
 0x2df   : > { %v1758_v5 = vpop.f32.mrf.mxu1  ;;  %v3991_v10 = vpop.f32.mrf.mxu3 }
 0x2e0   : > { %v3993_v47 = vpop.f32.mrf.mxu0  ;;  %v1782_v25 = vadd.f32 %v1758_v5, %v1696_v23  ;;  %v1613_v5 = vadd.f32 %v3958_v1, %v1518_v62 }
 0x2e2   : > { %v1699_v9 = vadd.f32 %v3961_v56, %v1613_v5 }
 0x2e6   : > { %v1844_v32 = vpop.f32.mrf.mxu2 }
 0x2e7   : > { %v1761_v17 = vpop.f32.mrf.mxu1  ;;  %v1931_v12 = vpop.f32.mrf.mxu3  ;;  %v1868_v36 = vadd.f32 %v1844_v32, %v1782_v25 }
 0x2e8   : > { %v2017_v31 = vpop.f32.mrf.mxu0  ;;  %v1783_v42 = vadd.f32 %v1761_v17, %v1697_v37 }
 0x2e9   : > { %v1955_v13 = vadd.f32 %v1931_v12, %v1868_v36 }
 0x2eb   : > { %v2041_v19 = vadd.f32 %v2017_v31, %v1955_v13 }
 0x2ee   : > { %v1847_v0 = vpop.f32.mrf.mxu2 }
 0x2ef   : > { %v1764_v15 = vpop.f32.mrf.mxu1  ;;  %v1934_v59 = vpop.f32.mrf.mxu3  ;;  %v1869_v34 = vadd.f32 %v1847_v0, %v1783_v42  ;;  %v1527_v42 = vadd.f32 %v3978_v51, %v3950_v40 }
 0x2f0   : > { %v2020_v30 = vpop.f32.mrf.mxu0  ;;  %v1784_v58 = vadd.f32 %v1764_v15, %v1698_v20  ;;  %v1521_v15 = vadd.f32 %v3963_v2, %v3939_v43  ;;  %v1524_v2 = vadd.f32 %v3969_v8, %v3943_v27 }
 0x2f1   : > { %v1956_v3 = vadd.f32 %v1934_v59, %v1869_v34 }
 0x2f2   : > { %v1614_v22 = vadd.f32 %v3965_v45, %v1521_v15 }
 0x2f3   : > { %v2042_v17 = vadd.f32 %v2020_v30, %v1956_v3  ;;  %v1615_v30 = vadd.f32 %v3974_v4, %v1524_v2  ;;  %v2237_v2 = vld [vmem:[%s3025_s25 + $0x10] sm:$0xff] }
 0x2f4   : > { %v1700_v43 = vadd.f32 %v3967_v7, %v1614_v22 }
 0x2f5   : > { %v1701_v8 = vadd.f32 %v3976_v61, %v1615_v30  ;;  %v2242_v30 = vld [vmem:[%s3025_s25 + $0x60] sm:$0xff] }
 0x2f6   : > { %v1850_v39 = vpop.f32.mrf.mxu2 }
 0x2f7   : > { %v1767_v44 = vpop.f32.mrf.mxu1  ;;  %v1937_v29 = vpop.f32.mrf.mxu3  ;;  %v1870_v35 = vadd.f32 %v1850_v39, %v1784_v58 }
 0x2f8   : > { %v2023_v28 = vpop.f32.mrf.mxu0  ;;  %v1785_v12 = vadd.f32 %v1767_v44, %v1699_v9 }
 0x2f9   : > { %v1957_v32 = vadd.f32 %v1937_v29, %v1870_v35  ;;  %v1616_v29 = vadd.f32 %v3980_v63, %v1527_v42 }
 0x2fb   : > { %v2043_v23 = vadd.f32 %v2023_v28, %v1957_v32  ;;  %v1702_v51 = vadd.f32 %v3985_v33, %v1616_v29 }
 0x2fe   : > { %v1853_v57 = vpop.f32.mrf.mxu2 }
 0x2ff   : > { %v3989_v48 = vpop.f32.mrf.mxu1  ;;  %v1940_v60 = vpop.f32.mrf.mxu3  ;;  %v1871_v24 = vadd.f32 %v1853_v57, %v1785_v12 }
 0x300   : > { %v2026_v14 = vpop.f32.mrf.mxu0  ;;  %v1786_v45 = vadd.f32 %v3989_v48, %v1700_v43  ;;  %v2236_v43 = vld [vmem:[%s3025_s25] sm:$0xff] }
 0x301   : > { %v1958_v44 = vadd.f32 %v1940_v60, %v1871_v24 }
 0x303   : > { %v2044_v39 = vadd.f32 %v2026_v14, %v1958_v44 }
 0x306   : > { %v1856_v0 = vpop.f32.mrf.mxu2 }
 0x307   : > { %v3995_v11 = vpop.f32.mrf.mxu1  ;;  %v1943_v26 = vpop.f32.mrf.mxu3  ;;  %v1872_v37 = vadd.f32 %v1856_v0, %v1786_v45  ;;  %v2240_v45 = vld [vmem:[%s3025_s25 + $0x40] sm:$0xff] }
 0x308   : > { %v2029_v49 = vpop.f32.mrf.mxu0  ;;  %v1787_v4 = vadd.f32 %v3995_v11, %v1701_v8  ;;  %v1530_v11 = vadd.f32 %v3987_v46, %v3953_v21 }
 0x309   : > { %v1959_v48 = vadd.f32 %v1943_v26, %v1872_v37  ;;  %v2239_v26 = vld [vmem:[%s3025_s25 + $0x30] sm:$0xff] }
 0x30a   : > { %v1617_v57 = vadd.f32 %v3991_v10, %v1530_v11 }
 0x30c   : > { %v1703_v21 = vadd.f32 %v3993_v47, %v1617_v57 }
 0x30e   : > { %v1859_v7 = vpop.f32.mrf.mxu2 }
 0x30f   : > { %v3997_v6 = vpop.f32.mrf.mxu1  ;;  %v1946_v34 = vpop.f32.mrf.mxu3 }
 0x310   : > { %v2032_v62 = vpop.f32.mrf.mxu0  ;;  %v1788_v63 = vadd.f32 %v3997_v6, %v1702_v51 }
 0x316   : > { %v1862_v40 = vpop.f32.mrf.mxu2 }
 0x317   : > { %v3999_v52 = vpop.f32.mrf.mxu1  ;;  %v1949_v5 = vpop.f32.mrf.mxu3 }
 0x318   : > { %v1789_v10 = vadd.f32 %v3999_v52, %v1703_v21 }
 0x31e   : > { %v1865_v6 = vpop.f32.mrf.mxu2 }
 0x31f   : > { %v2103_v53 = vpop.f32.mrf.mxu1  ;;  %v1875_v9 = vadd.f32 %v1865_v6, %v1789_v10  ;;  %v1952_v15 = vpop.f32.mrf.mxu3 }
 0x320   : > { %v2127_v54 = vadd.f32 %v2103_v53, %v2041_v19  ;;  %v2045_v53 = vadd.f32 %v2029_v49, %v1959_v48 }
 0x321   : > { %v1962_v47 = vadd.f32 %v1952_v15, %v1875_v9 }
 0x322   : > { %v2139_v38 = vadd.f32 %v4006_v55, %v2127_v54  ;;  %v1873_v54 = vadd.f32 %v1859_v7, %v1787_v4 }
 0x324   : > { %v2147_v50 = vmax.f32 %v2139_v38, 0.0  ;;  %v1960_v3 = vadd.f32 %v1946_v34, %v1873_v54 }
 0x326   : > { %2155 = vst.msk [vmem:[%s4013_s27] sm:$0xff] %vm1346_vm4, %v2147_v50  ;;  %2732 = vmatmul.msk.f32.vlgmr.msra.gmra.mxu2 %vm1346_vm4, %v2147_v50  ;;  %v2046_v58 = vadd.f32 %v2032_v62, %v1960_v3  ;;  %v1874_v50 = vadd.f32 %v1862_v40, %v1788_v63 }
 0x327   : > { %v2106_v41 = vpop.f32.mrf.mxu1 }
 0x328   : > { %v2128_v16 = vadd.f32 %v2106_v41, %v2042_v17  ;;  %v1961_v46 = vadd.f32 %v1949_v5, %v1874_v50  ;;  %v2035_v41 = vpop.f32.mrf.mxu0 }
 0x32a   : > { %v2140_v1 = vadd.f32 %v4006_v55, %v2128_v16  ;;  %v2047_v60 = vadd.f32 %v2035_v41, %v1961_v46 }
 0x32c   : > { %v2148_v31 = vmax.f32 %v2140_v1, 0.0 }
 0x32e   : > { %2156 = vst.msk [vmem:[%s4013_s27 + $0x8] sm:$0xff] %vm1346_vm4, %v2148_v31  ;;  %2733 = vmatmul.msk.f32.gmra.mxu2 %vm1346_vm4, %v2148_v31 }
 0x32f   : > { %v2109_v56 = vpop.f32.mrf.mxu1 }
 0x330   : > { %v2129_v25 = vadd.f32 %v2109_v56, %v2043_v23  ;;  %v2038_v14 = vpop.f32.mrf.mxu0  ;;  %v2846_v56 = vld [vmem:[%s4266_s7] ss:$0 sm:$0xff] }
 0x331   : > { %v2048_v52 = vadd.f32 %v2038_v14, %v1962_v47 }
 0x332   : > { %v2141_v59 = vadd.f32 %v4006_v55, %v2129_v25 }
 0x334   : > { %v2149_v36 = vmax.f32 %v2141_v59, 0.0  ;;  %v2238_v59 = vld [vmem:[%s3025_s25 + $0x20] sm:$0xff] }
 0x336   : > { %2157 = vst.msk [vmem:[%s4013_s27 + $0x10] sm:$0xff] %vm1346_vm4, %v2149_v36  ;;  %2734 = vmatmul.msk.f32.gmra.mxu2 %vm1346_vm4, %v2149_v36  ;;  %v2241_v36 = vld [vmem:[%s3025_s25 + $0x50] sm:$0xff] }
 0x337   : > { %v2112_v13 = vpop.f32.mrf.mxu1 }
 0x338   : > { %v2130_v27 = vadd.f32 %v2112_v13, %v2044_v39 }
 0x33a   : > { %v2142_v18 = vadd.f32 %v4006_v55, %v2130_v27 }
 0x33c   : > { %v2150_v19 = vmax.f32 %v2142_v18, 0.0 }
 0x33e   : > { %2158 = vst.msk [vmem:[%s4013_s27 + $0x18] sm:$0xff] %vm1346_vm4, %v2150_v19  ;;  %2735 = vmatmul.msk.f32.gmra.mxu2 %vm1346_vm4, %v2150_v19 }
 0x33f   : > { %v2115_v61 = vpop.f32.mrf.mxu1 }
 0x340   : > { %v2131_v20 = vadd.f32 %v2115_v61, %v2045_v53 }
 0x342   : > { %v2143_v28 = vadd.f32 %v4006_v55, %v2131_v20 }
 0x344   : > { %v2151_v38 = vmax.f32 %v2143_v28, 0.0 }
 0x346   : > { %2159 = vst.msk [vmem:[%s4013_s27 + $0x20] sm:$0xff] %vm1346_vm4, %v2151_v38  ;;  %2736 = vmatmul.msk.f32.gmra.mxu2 %vm1346_vm4, %v2151_v38 }
 0x347   : > { %v2118_v33 = vpop.f32.mrf.mxu1 }
 0x348   : > { %v2132_v17 = vadd.f32 %v2118_v33, %v2046_v58 }
 0x34a   : > { %v2144_v35 = vadd.f32 %v4006_v55, %v2132_v17 }
 0x34c   : > { %v2152_v16 = vmax.f32 %v2144_v35, 0.0 }
 0x34e   : > { %2160 = vst.msk [vmem:[%s4013_s27 + $0x28] sm:$0xff] %vm1346_vm4, %v2152_v16  ;;  %2737 = vmatmul.msk.f32.gmra.mxu2 %vm1346_vm4, %v2152_v16 }
 0x34f   : > { %v2121_v32 = vpop.f32.mrf.mxu1 }
 0x350   : > { %v2133_v1 = vadd.f32 %v2121_v32, %v2047_v60 }
 0x352   : > { %v2145_v12 = vadd.f32 %v4006_v55, %v2133_v1 }
 0x354   : > { %v2153_v31 = vmax.f32 %v2145_v12, 0.0 }
 0x356   : > { %2161 = vst.msk [vmem:[%s4013_s27 + $0x30] sm:$0xff] %vm1346_vm4, %v2153_v31  ;;  %2738 = vmatmul.msk.f32.gmra.mxu2 %vm1346_vm4, %v2153_v31 }
 0x357   : > { %v2124_v0 = vpop.f32.mrf.mxu1 }
 0x358   : > { %v2134_v22 = vadd.f32 %v2124_v0, %v2048_v52 }
 0x35a   : > { %v2146_v23 = vadd.f32 %v4006_v55, %v2134_v22  ;;  %v2243_v55 = vld [vmem:[%s3025_s25 + $0x70] sm:$0xff] }
 0x35c   : > { %v2154_v24 = vmax.f32 %v2146_v23, 0.0 }
 0x35e   : > { %2162 = vst.msk [vmem:[%s4013_s27 + $0x38] sm:$0xff] %vm1346_vm4, %v2154_v24  ;;  %2739 = vmatmul.msk.f32.gmra.mxu2 %vm1346_vm4, %v2154_v24 }
 0x3a9   : > { %v2212_v25 = vpop.f32.mrf.mxu2 }
 0x3aa   : > { %v4072_v44 = vadd.f32 %v2846_v56, %v2212_v25 }
 0x3ac   : > { %v2244_v39 = vadd.f32 %v2236_v43, %v4072_v44  ;;  %2276 = vrot.lane.b32.xlu0 %v4072_v44, %s2914_s22 }
 0x3ae   : > { %2252 = vst.msk [vmem:[%s4085_s28] sm:$0xff] %vm1346_vm4, %v2244_v39 }
 0x3b1   : > { %v2215_v37 = vpop.f32.mrf.mxu2 }
 0x3b2   : > { %v4092_v49 = vadd.f32 %v2846_v56, %v2215_v37 }
 0x3b4   : > { %v2245_v7 = vadd.f32 %v2237_v2, %v4092_v49  ;;  %2278 = vrot.lane.b32.xlu1 %v4092_v49, %s2914_s22 }
 0x3b6   : > { %2253 = vst.msk [vmem:[%s4085_s28 + $0x10] sm:$0xff] %vm1346_vm4, %v2245_v7 }
 0x3b9   : > { %v2218_v13 = vpop.f32.mrf.mxu2 }
 0x3ba   : > { %v4099_v27 = vadd.f32 %v2846_v56, %v2218_v13 }
 0x3bc   : > { %v2246_v8 = vadd.f32 %v2238_v59, %v4099_v27  ;;  %2280 = vrot.lane.b32.xlu2 %v4099_v27, %s2914_s22 }
 0x3be   : > { %2254 = vst.msk [vmem:[%s4085_s28 + $0x20] sm:$0xff] %vm1346_vm4, %v2246_v8 }
 0x3c1   : > { %v2221_v42 = vpop.f32.mrf.mxu2 }
 0x3c2   : > { %v4106_v48 = vadd.f32 %v2846_v56, %v2221_v42 }
 0x3c4   : > { %v2247_v18 = vadd.f32 %v2239_v26, %v4106_v48  ;;  %2282 = vrot.lane.b32.xlu0 %v4106_v48, %s2914_s22 }
 0x3c6   : > { %2255 = vst.msk [vmem:[%s4085_s28 + $0x30] sm:$0xff] %vm1346_vm4, %v2247_v18 }
 0x3c9   : > { %v2224_v4 = vpop.f32.mrf.mxu2 }
 0x3ca   : > { %v4113_v19 = vadd.f32 %v2846_v56, %v2224_v4 }
 0x3cc   : > { %v2248_v34 = vadd.f32 %v2240_v45, %v4113_v19  ;;  %2284 = vrot.lane.b32.xlu1 %v4113_v19, %s2914_s22 }
 0x3ce   : > { %2256 = vst.msk [vmem:[%s4085_s28 + $0x40] sm:$0xff] %vm1346_vm4, %v2248_v34 }
 0x3d1   : > { %v2227_v29 = vpop.f32.mrf.mxu2 }
 0x3d2   : > { %v4120_v53 = vadd.f32 %v2846_v56, %v2227_v29 }
 0x3d4   : > { %v2249_v54 = vadd.f32 %v2241_v36, %v4120_v53  ;;  %2286 = vrot.lane.b32.xlu2 %v4120_v53, %s2914_s22 }
 0x3d6   : > { %2257 = vst.msk [vmem:[%s4085_s28 + $0x50] sm:$0xff] %vm1346_vm4, %v2249_v54 }
 0x3d9   : > { %v2230_v61 = vpop.f32.mrf.mxu2 }
 0x3da   : > { %v4127_v20 = vadd.f32 %v2846_v56, %v2230_v61 }
 0x3dc   : > { %v2250_v62 = vadd.f32 %v2242_v30, %v4127_v20  ;;  %2288 = vrot.lane.b32.xlu0 %v4127_v20, %s2914_s22 }
 0x3de   : > { %2258 = vst.msk [vmem:[%s4085_s28 + $0x60] sm:$0xff] %vm1346_vm4, %v2250_v62 }
 0x3e1   : > { %v2233_v40 = vpop.f32.mrf.mxu2 }
 0x3e2   : > { %v4134_v51 = vadd.f32 %v2846_v56, %v2233_v40 }
 0x3e4   : > { %v2251_v11 = vadd.f32 %v2243_v55, %v4134_v51  ;;  %2290 = vrot.lane.b32.xlu1 %v4134_v51, %s2914_s22 }
 0x3e6   : > { %2259 = vst.msk [vmem:[%s4085_s28 + $0x70] sm:$0xff] %vm1346_vm4, %v2251_v11 }
 0x3e7   : > { %2874 = shalt.err (!%p2871_p3)
}
 0x3e8   : > { %s2915_s29 = smov 128   ;;  %s2916_s2 = smov 8   ;;  %vm2308_vm6 = vcmask 523520  }
 0x3e9   : > { %2799 = dma.vmem_to_hbm [thread:$0]  (%p3005_p5), %s2385_s17, 1024, %s2387_s0, %s2367_s23, %s2915_s29, %s2915_s29, %s2916_s2  }
 0x3ed   : > { %v2262_v28 = vld [vmem:[%s3025_s25 + $0x20] sm:$0xff]  ;;  %v2261_v57 = vld [vmem:[%s3025_s25 + $0x10] sm:$0xff] }
 0x3ee   : > { %v2260_v63 = vld [vmem:[%s3025_s25] sm:$0xff]  ;;  %v2265_v58 = vld [vmem:[%s3025_s25 + $0x50] sm:$0xff] }
 0x3ef   : > { %v2263_v50 = vld [vmem:[%s3025_s25 + $0x30] sm:$0xff]  ;;  %v2264_v5 = vld [vmem:[%s3025_s25 + $0x40] sm:$0xff] }
 0x3f0   : > { %v2266_v33 = vld [vmem:[%s3025_s25 + $0x60] sm:$0xff]  ;;  %v2267_v17 = vld [vmem:[%s3025_s25 + $0x70] sm:$0xff] }
 0x416   : > { %v4158_v3 = vpop.permute.xlu2 %2280 }
 0x417   : > { %v2302_v38 = vadd.f32 %v4158_v3, %v2262_v28 }
 0x419   : > { %2311 = vst.msk [vmem:[%s4085_s28 + $0x20] sm:$0xff] %vm2308_vm6, %v2302_v38 }
 0x41e   : > { %v2277_v21 = vpop.permute.xlu0 %2276 }
 0x41f   : > { %v2300_v46 = vadd.f32 %v2277_v21, %v2260_v63 }
 0x421   : > { %2309 = vst.msk [vmem:[%s4085_s28] sm:$0xff] %vm2308_vm6, %v2300_v46 }
 0x426   : > { %v2279_v35 = vpop.permute.xlu1 %2278 }
 0x427   : > { %v2301_v41 = vadd.f32 %v2279_v35, %v2261_v57 }
 0x429   : > { %2310 = vst.msk [vmem:[%s4085_s28 + $0x10] sm:$0xff] %vm2308_vm6, %v2301_v41 }
 0x42e   : > { %v2287_v6 = vpop.permute.xlu2 %2286 }
 0x42f   : > { %v2305_v10 = vadd.f32 %v2287_v6, %v2265_v58 }
 0x431   : > { %2314 = vst.msk [vmem:[%s4085_s28 + $0x50] sm:$0xff] %vm2308_vm6, %v2305_v10 }
 0x436   : > { %v2283_v16 = vpop.permute.xlu0 %2282 }
 0x437   : > { %v2303_v60 = vadd.f32 %v2283_v16, %v2263_v50 }
 0x439   : > { %2312 = vst.msk [vmem:[%s4085_s28 + $0x30] sm:$0xff] %vm2308_vm6, %v2303_v60 }
 0x43e   : > { %v2285_v9 = vpop.permute.xlu1 %2284 }
 0x43f   : > { %v2304_v15 = vadd.f32 %v2285_v9, %v2264_v5 }
 0x441   : > { %2313 = vst.msk [vmem:[%s4085_s28 + $0x40] sm:$0xff] %vm2308_vm6, %v2304_v15 }
 0x44e   : > { %v2289_v32 = vpop.permute.xlu0 %2288 }
 0x44f   : > { %v2306_v1 = vadd.f32 %v2289_v32, %v2266_v33 }
 0x451   : > { %2315 = vst.msk [vmem:[%s4085_s28 + $0x60] sm:$0xff] %vm2308_vm6, %v2306_v1 }
 0x456   : > { %v2291_v47 = vpop.permute.xlu1 %2290 }
 0x457   : > { %v2307_v12 = vadd.f32 %v2291_v47, %v2267_v17 }
 0x459   : > { %2316 = vst.msk [vmem:[%s4085_s28 + $0x70] sm:$0xff] %vm2308_vm6, %v2307_v12 }
 0x460   : > { %v2740_v14 = vld [vmem:[%s3025_s25 + $0x8] sm:$0xff]  ;;  %v2741_v31 = vld [vmem:[%s3025_s25 + $0x18] sm:$0xff] }
 0x461   : > { %v2742_v52 = vld [vmem:[%s3025_s25 + $0x28] sm:$0xff]  ;;  %v2743_v0 = vld [vmem:[%s3025_s25 + $0x38] sm:$0xff]  ;;  %v2325_v24 = vadd.f32 %v2740_v14, %v4072_v44  ;;  %v2326_v56 = vadd.f32 %v2741_v31, %v4092_v49 }
 0x462   : > { %v2744_v22 = vld [vmem:[%s3025_s25 + $0x48] sm:$0xff]  ;;  %v2745_v23 = vld [vmem:[%s3025_s25 + $0x58] sm:$0xff]  ;;  %v2327_v25 = vadd.f32 %v2742_v52, %v4099_v27  ;;  %v2328_v59 = vadd.f32 %v2743_v0, %v4106_v48 }
 0x463   : > { %v2746_v43 = vld [vmem:[%s3025_s25 + $0x68] sm:$0xff]  ;;  %v2747_v2 = vld [vmem:[%s3025_s25 + $0x78] sm:$0xff]  ;;  %v2329_v26 = vadd.f32 %v2744_v22, %v4113_v19  ;;  %v2330_v44 = vadd.f32 %v2745_v23, %v4120_v53 }
 0x464   : > { %2748 = vst.msk [vmem:[%s4085_s28 + $0x8] sm:$0xff] %vm1346_vm4, %v2325_v24  ;;  %v2331_v45 = vadd.f32 %v2746_v43, %v4127_v20  ;;  %v2332_v36 = vadd.f32 %v2747_v2, %v4134_v51 }
 0x465   : > { %2749 = vst.msk [vmem:[%s4085_s28 + $0x18] sm:$0xff] %vm1346_vm4, %v2326_v56 }
 0x466   : > { %2750 = vst.msk [vmem:[%s4085_s28 + $0x28] sm:$0xff] %vm1346_vm4, %v2327_v25 }
 0x467   : > { %2751 = vst.msk [vmem:[%s4085_s28 + $0x38] sm:$0xff] %vm1346_vm4, %v2328_v59 }
 0x468   : > { %2752 = vst.msk [vmem:[%s4085_s28 + $0x48] sm:$0xff] %vm1346_vm4, %v2329_v26 }
 0x469   : > { %2753 = vst.msk [vmem:[%s4085_s28 + $0x58] sm:$0xff] %vm1346_vm4, %v2330_v44 }
 0x46a   : > { %2754 = vst.msk [vmem:[%s4085_s28 + $0x68] sm:$0xff] %vm1346_vm4, %v2331_v45 }
 0x46b   : > { %2755 = vst.msk [vmem:[%s4085_s28 + $0x78] sm:$0xff] %vm1346_vm4, %v2332_v36 }
 0x472   : > { %v2756_v30 = vld [vmem:[%s3025_s25 + $0x8] sm:$0xff]  ;;  %v2757_v55 = vld [vmem:[%s3025_s25 + $0x18] sm:$0xff] }
 0x473   : > { %v2758_v39 = vld [vmem:[%s3025_s25 + $0x28] sm:$0xff]  ;;  %v2759_v37 = vld [vmem:[%s3025_s25 + $0x38] sm:$0xff]  ;;  %v2350_v13 = vadd.f32 %v2756_v30, %v2277_v21  ;;  %v2351_v27 = vadd.f32 %v2757_v55, %v2279_v35 }
 0x474   : > { %v2760_v49 = vld [vmem:[%s3025_s25 + $0x48] sm:$0xff]  ;;  %v2761_v7 = vld [vmem:[%s3025_s25 + $0x58] sm:$0xff]  ;;  %v2352_v8 = vadd.f32 %v2758_v39, %v4158_v3  ;;  %v2353_v18 = vadd.f32 %v2759_v37, %v2283_v16 }
 0x475   : > { %v2762_v42 = vld [vmem:[%s3025_s25 + $0x68] sm:$0xff]  ;;  %v2763_v48 = vld [vmem:[%s3025_s25 + $0x78] sm:$0xff]  ;;  %v2354_v4 = vadd.f32 %v2760_v49, %v2285_v9  ;;  %v2355_v19 = vadd.f32 %v2761_v7, %v2287_v6 }
 0x476   : > { %2764 = vst.msk [vmem:[%s4085_s28 + $0x8] sm:$0xff] %vm2308_vm6, %v2350_v13  ;;  %v2356_v34 = vadd.f32 %v2762_v42, %v2289_v32  ;;  %v2357_v29 = vadd.f32 %v2763_v48, %v2291_v47 }
 0x477   : > { %2765 = vst.msk [vmem:[%s4085_s28 + $0x18] sm:$0xff] %vm2308_vm6, %v2351_v27 }
 0x478   : > { %2766 = vst.msk [vmem:[%s4085_s28 + $0x28] sm:$0xff] %vm2308_vm6, %v2352_v8 }
 0x479   : > { %2767 = vst.msk [vmem:[%s4085_s28 + $0x38] sm:$0xff] %vm2308_vm6, %v2353_v18 }
 0x47a   : > { %2768 = vst.msk [vmem:[%s4085_s28 + $0x48] sm:$0xff] %vm2308_vm6, %v2354_v4 }
 0x47b   : > { %2769 = vst.msk [vmem:[%s4085_s28 + $0x58] sm:$0xff] %vm2308_vm6, %v2355_v19 }
 0x47c   : > { %2770 = vst.msk [vmem:[%s4085_s28 + $0x68] sm:$0xff] %vm2308_vm6, %v2356_v34 }
 0x47d   : > { %2771 = vst.msk [vmem:[%s4085_s28 + $0x78] sm:$0xff] %vm2308_vm6, %v2357_v29 }
 0x47e PF: > { %p2805_p4 = scmp.ge.s32.totalorder %s2909_s12, 2  ;;  %s2404_s1 = sand.u32 1, %s2897_s30  }
 0x47f   : > { %s2405_s3 = scalar_lea.sflag [#allocation5], %s2404_s1 }
 0x480   : > { %p2802_p5 = pnand %p2805_p4, %p3009_p6 }
 0x482   : > { %p2803_p7 = pneg %p2802_p5 }
 0x484   : > { %2892 = dma.done.wait (%p2803_p7), %s2405_s3, 1024  }
 0x485   : > { %2894 = vsyncadd (%p2803_p7), %s2405_s3, 4294966272  ;;  %p20_p8 = scmp.ge.s32.totalorder %s2992_s15, 4   ;;  %s4283_s30 = smov %s2901_s10 }
 0x486   : > { %s4284_s10 = smov %s2905_s11  ;;  %s4285_s11 = smov %s3003_s18 }
 0x487   : > { %s4286_s12 = smov %s2992_s15  ;;  %22 = sbr.rel (!%p20_p8) target bundleno = 8 (0x8), region = 124 }
 0x48c   :  { %2419 = vsyncpa [#allocation5], 1 }
 0x48d   :  { %2421 = vsyncpa [#allocation5 + $0x1], 1 }

</bundles_post_ra>
